<compile_context>
chip_gen: v6e
topology: v6e:2x2x1
jax: 0.10.0
libtpu: 0.0.40
codegen_flags: <defaults>
</compile_context>

<pallas_src>
import jax
import jax.numpy as jnp
from jax.experimental import pallas as pl
from jax.experimental.pallas import tpu as pltpu

K = 5            # Conv1d kernel size used by all three layers.
CONV_HIDDEN = 64
FC_HIDDEN = 128


# ---------------------------------------------------------------------------
# Fused conv stack: 3 x (Conv1d(k=5, valid, stride 1) + bias + ReLU).
# One batch element per grid step; intermediates stay in VMEM.
# ---------------------------------------------------------------------------
def _conv_stack_kernel(x_ref, w1_ref, b1_ref, w2_ref, b2_ref, w3_ref, b3_ref,
                       o_ref):
    # x_ref : (Cin_pad, L_pad)        zero-padded channels / length
    # wN_ref: (Cout, K*Cin_layerN)    im2col weight layout
    # bN_ref: (Cout, 1)
    # o_ref : (Cout, L_out)           valid prefix of the layer-3 output

    def conv_relu(a, w_ref, b_ref):
        lout = a.shape[-1] - (K - 1)
        # im2col patch slab: rows [k*C:(k+1)*C] hold a[:, k:k+lout].
        # Pieces are 8- or 64-row tall -> sublane-aligned concatenation.
        patches = jnp.concatenate([a[:, k:k + lout] for k in range(K)], axis=0)
        y = jnp.dot(w_ref[...], patches, preferred_element_type=jnp.float32)
        return jnp.maximum(y + b_ref[...], 0.0)

    h = conv_relu(x_ref[...], w1_ref, b1_ref)
    h = conv_relu(h, w2_ref, b2_ref)
    h = conv_relu(h, w3_ref, b3_ref)
    # Only the first L_out columns are valid (padding columns are garbage).
    o_ref[...] = h[:, : o_ref.shape[-1]].astype(o_ref.dtype)


def conv_stack(x_pad, w1f, b1, w2f, b2, w3f, b3, l_out):
    n, cin_pad, l_pad = x_pad.shape
    cout = w1f.shape[0]
    return pl.pallas_call(
        _conv_stack_kernel,
        out_shape=jax.ShapeDtypeStruct((n, cout, l_out), jnp.float32),
        grid=(n,),
        in_specs=[
            pl.BlockSpec((None, cin_pad, l_pad), lambda i: (i, 0, 0)),
            pl.BlockSpec(w1f.shape, lambda i: (0, 0)),
            pl.BlockSpec(b1.shape, lambda i: (0, 0)),
            pl.BlockSpec(w2f.shape, lambda i: (0, 0)),
            pl.BlockSpec(b2.shape, lambda i: (0, 0)),
            pl.BlockSpec(w3f.shape, lambda i: (0, 0)),
            pl.BlockSpec(b3.shape, lambda i: (0, 0)),
        ],
        out_specs=pl.BlockSpec((None, cout, l_out), lambda i: (i, 0, 0)),
        compiler_params=pltpu.CompilerParams(
            dimension_semantics=("parallel",),
            vmem_limit_bytes=32 * 1024 * 1024,
        ),
    )(x_pad, w1f, b1, w2f, b2, w3f, b3)


# ---------------------------------------------------------------------------
# Classifier: Linear(F, 128) -> ReLU -> Linear(128, num_classes), with the
# fc1 reduction tiled/streamed over F and fc2 fused into the finalize step.
# ---------------------------------------------------------------------------
def _mlp_kernel(x_ref, w1_ref, b1_ref, w2_ref, b2_ref, o_ref, acc_ref):
    step = pl.program_id(0)

    @pl.when(step == 0)
    def _():
        acc_ref[...] = jnp.zeros_like(acc_ref)

    # bf16 x bf16 -> f32 accumulation on the MXU.
    acc_ref[...] += jnp.dot(x_ref[...], w1_ref[...],
                            preferred_element_type=jnp.float32)

    @pl.when(step == pl.num_programs(0) - 1)
    def _():
        h = jnp.maximum(acc_ref[...] + b1_ref[...], 0.0)
        out = jnp.dot(h.astype(w2_ref.dtype), w2_ref[...],
                      preferred_element_type=jnp.float32) + b2_ref[...]
        o_ref[...] = out.astype(o_ref.dtype)


def mlp(x, w1, b1, w2, b2, *, tile_f=2048):
    n, f = x.shape
    hdim = w1.shape[1]
    c = w2.shape[1]
    tile_f = min(tile_f, f)
    assert f % tile_f == 0, (f, tile_f)
    cost = pl.CostEstimate(
        flops=2 * n * f * hdim + 2 * n * hdim * c,
        transcendentals=0,
        bytes_accessed=(x.size * x.dtype.itemsize
                        + w1.size * w1.dtype.itemsize
                        + w2.size * w2.dtype.itemsize
                        + n * c * 4),
    )
    return pl.pallas_call(
        _mlp_kernel,
        out_shape=jax.ShapeDtypeStruct((n, c), jnp.float32),
        grid=(f // tile_f,),
        in_specs=[
            pl.BlockSpec((n, tile_f), lambda k: (0, k)),
            pl.BlockSpec((tile_f, hdim), lambda k: (k, 0)),
            pl.BlockSpec((1, hdim), lambda k: (0, 0)),
            pl.BlockSpec((hdim, c), lambda k: (0, 0)),
            pl.BlockSpec((1, c), lambda k: (0, 0)),
        ],
        out_specs=pl.BlockSpec((n, c), lambda k: (0, 0)),
        scratch_shapes=[pltpu.VMEM((n, hdim), jnp.float32)],
        compiler_params=pltpu.CompilerParams(
            dimension_semantics=("arbitrary",),
            vmem_limit_bytes=32 * 1024 * 1024,
        ),
        cost_estimate=cost,
    )(x, w1, b1, w2, b2)


# ---------------------------------------------------------------------------
# Full RCSNet forward.
# ---------------------------------------------------------------------------
def _round_up(v, m):
    return (v + m - 1) // m * m


def _flatten_conv_weight(w):
    # torch layout (Cout, Cin, K) -> im2col layout (Cout, K*Cin):
    # element [o, k*Cin + c] = w[o, c, k], matching the patch slab order.
    cout, cin, k = w.shape
    return jnp.transpose(w, (0, 2, 1)).reshape(cout, k * cin)


@jax.jit
def rcsnet_forward(x, params):
    n, cin, l = x.shape
    l_out = l - 3 * (K - 1)           # valid length after the 3 "valid" convs
    cin_pad = _round_up(cin, 8)       # sublane-align layer-1 input channels
    l_pad = _round_up(l, 128)         # lane-align the sequence length

    x_pad = jnp.pad(x, ((0, 0), (0, cin_pad - cin), (0, l_pad - l)))
    w1 = jnp.pad(params["w_conv1"], ((0, 0), (0, cin_pad - cin), (0, 0)))

    h = conv_stack(
        x_pad,
        _flatten_conv_weight(w1), params["b_conv1"][:, None],
        _flatten_conv_weight(params["w_conv2"]), params["b_conv2"][:, None],
        _flatten_conv_weight(params["w_conv3"]), params["b_conv3"][:, None],
        l_out,
    )
    # flatten (N, C, L) -> (N, C*L): same memory order as torch .view.
    # Streamed activations in bf16 (f32 accumulation in the kernel).
    flat = h.reshape(n, -1).astype(jnp.bfloat16)
    return mlp(flat, params["w_fc1"], params["b_fc1"],
               params["w_fc2"], params["b_fc2"])


# ---------------------------------------------------------------------------
# Parameters (shapes follow RCSNet.__init__; fc weights pre-transposed).
# ---------------------------------------------------------------------------
def init_params(key, input_dim, num_classes, seq_len,
                conv_hidden=CONV_HIDDEN, fc_hidden=FC_HIDDEN):
    flat_dim = conv_hidden * (seq_len - 3 * (K - 1))
    keys = jax.random.split(key, 10)

    def w(rk, shape, fan_in, dtype=jnp.float32):
        return (jax.random.normal(rk, shape, jnp.float32)
                / jnp.sqrt(fan_in)).astype(dtype)

    return {
        # conv weights in torch layout (Cout, Cin, K), f32 (tiny -> keep f32)
        "w_conv1": w(keys[0], (conv_hidden, input_dim, K), input_dim * K),
        "b_conv1": w(keys[1], (conv_hidden,), conv_hidden),
        "w_conv2": w(keys[2], (conv_hidden, conv_hidden, K), conv_hidden * K),
        "b_conv2": w(keys[3], (conv_hidden,), conv_hidden),
        "w_conv3": w(keys[4], (conv_hidden, conv_hidden, K), conv_hidden * K),
        "b_conv3": w(keys[5], (conv_hidden,), conv_hidden),
        # fc weights pre-transposed (in, out), stored bf16 (dominant HBM stream)
        "w_fc1": w(keys[6], (flat_dim, fc_hidden), flat_dim, jnp.bfloat16),
        "b_fc1": w(keys[7], (1, fc_hidden), fc_hidden),
        "w_fc2": w(keys[8], (fc_hidden, num_classes), fc_hidden, jnp.bfloat16),
        "b_fc2": w(keys[9], (1, num_classes), num_classes),
    }


# ---------------------------------------------------------------------------
# Pure-JAX reference (silent correctness check).
# ---------------------------------------------------------------------------
def rcsnet_reference(x, params):
    def conv(xin, w, b):
        k = w.shape[-1]
        lout = xin.shape[-1] - k + 1
        acc = sum(jnp.einsum("oc,ncl->nol", w[:, :, i], xin[:, :, i:i + lout])
                  for i in range(k))
        return jnp.maximum(acc + b[None, :, None], 0.0)

    h = conv(x, params["w_conv1"], params["b_conv1"])
    h = conv(h, params["w_conv2"], params["b_conv2"])
    h = conv(h, params["w_conv3"], params["b_conv3"])
    flat = h.reshape(h.shape[0], -1).astype(jnp.bfloat16)
    hid = jnp.dot(flat, params["w_fc1"],
                  preferred_element_type=jnp.float32) + params["b_fc1"]
    hid = jnp.maximum(hid, 0.0)
    return jnp.dot(hid.astype(jnp.bfloat16), params["w_fc2"],
                   preferred_element_type=jnp.float32) + params["b_fc2"]


if __name__ == "__main__":
    # Small consistent shapes: batch=2, input_dim=4, seq_len=140 -> flatten 8192.
    batch, input_dim, num_classes, seq_len = 2, 4, 10, 140

    key = jax.random.PRNGKey(0)
    kx, kp = jax.random.split(key)
    x = jax.random.normal(kx, (batch, input_dim, seq_len), jnp.float32)
    params = init_params(kp, input_dim, num_classes, seq_len)

    out = jax.block_until_ready(rcsnet_forward(x, params))
    ref = jax.block_until_ready(rcsnet_reference(x, params))

    assert out.shape == (batch, num_classes), out.shape
    assert jnp.allclose(out, ref, atol=2e-2, rtol=2e-2), (
        float(jnp.max(jnp.abs(out - ref))))

    # TODO(synk): Dropout layers are identity here (eval-mode forward).
    print("KERNEL_OK")
</pallas_src>

<mosaic_0001>
module attributes {stable_mosaic.version = 11 : i64} {
  func.func @_conv_stack_kernel(%arg0: i32, %arg1: memref<1x8x256xf32, #tpu.memory_space<vmem>>, %arg2: memref<64x40xf32, #tpu.memory_space<vmem>>, %arg3: memref<64x1xf32, #tpu.memory_space<vmem>>, %arg4: memref<64x320xf32, #tpu.memory_space<vmem>>, %arg5: memref<64x1xf32, #tpu.memory_space<vmem>>, %arg6: memref<64x320xf32, #tpu.memory_space<vmem>>, %arg7: memref<64x1xf32, #tpu.memory_space<vmem>>, %arg8: memref<1x64x128xf32, #tpu.memory_space<vmem>>) attributes {dimension_semantics = [#tpu.dimension_semantics<parallel>], iteration_bounds = array<i64: 2>, scalar_prefetch = 0 : i64, scratch_operands = 0 : i64, tpu.core_type = #tpu.core_type<tc>, window_params = [{transform_indices = @transform_0, window_bounds = array<i64: 1, 8, 256>}, {pipeline_mode = #tpu.pipeline_mode<synchronous>, transform_indices = @transform_1, window_bounds = array<i64: 64, 40>}, {pipeline_mode = #tpu.pipeline_mode<synchronous>, transform_indices = @transform_2, window_bounds = array<i64: 64, 1>}, {pipeline_mode = #tpu.pipeline_mode<synchronous>, transform_indices = @transform_3, window_bounds = array<i64: 64, 320>}, {pipeline_mode = #tpu.pipeline_mode<synchronous>, transform_indices = @transform_4, window_bounds = array<i64: 64, 1>}, {pipeline_mode = #tpu.pipeline_mode<synchronous>, transform_indices = @transform_5, window_bounds = array<i64: 64, 320>}, {pipeline_mode = #tpu.pipeline_mode<synchronous>, transform_indices = @transform_6, window_bounds = array<i64: 64, 1>}, {transform_indices = @transform_7, window_bounds = array<i64: 1, 64, 128>}]} {
    %c0 = arith.constant 0 : index
    %c0_0 = arith.constant 0 : index
    %c0_1 = arith.constant 0 : index
    %0 = vector.load %arg1[%c0, %c0_0, %c0_1] : memref<1x8x256xf32, #tpu.memory_space<vmem>>, vector<1x8x256xf32>
    %1 = vector.shape_cast %0 : vector<1x8x256xf32> to vector<8x256xf32>
    %2 = vector.extract_strided_slice %1 {offsets = [0, 0], sizes = [8, 252], strides = [1, 1]} : vector<8x256xf32> to vector<8x252xf32>
    %3 = vector.extract_strided_slice %1 {offsets = [0, 1], sizes = [8, 252], strides = [1, 1]} : vector<8x256xf32> to vector<8x252xf32>
    %4 = vector.extract_strided_slice %1 {offsets = [0, 2], sizes = [8, 252], strides = [1, 1]} : vector<8x256xf32> to vector<8x252xf32>
    %5 = vector.extract_strided_slice %1 {offsets = [0, 3], sizes = [8, 252], strides = [1, 1]} : vector<8x256xf32> to vector<8x252xf32>
    %6 = vector.extract_strided_slice %1 {offsets = [0, 4], sizes = [8, 252], strides = [1, 1]} : vector<8x256xf32> to vector<8x252xf32>
    %7 = tpu.concatenate %2, %3, %4, %5, %6 in 0 : vector<8x252xf32>, vector<8x252xf32>, vector<8x252xf32>, vector<8x252xf32>, vector<8x252xf32> -> vector<40x252xf32>
    %c0_2 = arith.constant 0 : index
    %c0_3 = arith.constant 0 : index
    %8 = vector.load %arg2[%c0_2, %c0_3] : memref<64x40xf32, #tpu.memory_space<vmem>>, vector<64x40xf32>
    %cst = arith.constant dense<0.000000e+00> : vector<64x252xf32>
    %9 = tpu.matmul %8, %7, %cst {dimension_numbers = #tpu.dot_dimension_numbers<[1], [0], [0], [1], [0, 0, 1, 1], [], []>} : vector<64x40xf32>, vector<40x252xf32>, vector<64x252xf32> -> vector<64x252xf32>
    %c0_4 = arith.constant 0 : index
    %c0_5 = arith.constant 0 : index
    %10 = vector.load %arg3[%c0_4, %c0_5] : memref<64x1xf32, #tpu.memory_space<vmem>>, vector<64x1xf32>
    %11 = vector.broadcast %10 : vector<64x1xf32> to vector<64x252xf32>
    %12 = arith.addf %9, %11 : vector<64x252xf32>
    %cst_6 = arith.constant 0.000000e+00 : f32
    %13 = vector.broadcast %cst_6 : f32 to vector<64x252xf32>
    %14 = arith.maximumf %12, %13 : vector<64x252xf32>
    %15 = vector.extract_strided_slice %14 {offsets = [0, 0], sizes = [64, 248], strides = [1, 1]} : vector<64x252xf32> to vector<64x248xf32>
    %16 = vector.extract_strided_slice %14 {offsets = [0, 1], sizes = [64, 248], strides = [1, 1]} : vector<64x252xf32> to vector<64x248xf32>
    %17 = vector.extract_strided_slice %14 {offsets = [0, 2], sizes = [64, 248], strides = [1, 1]} : vector<64x252xf32> to vector<64x248xf32>
    %18 = vector.extract_strided_slice %14 {offsets = [0, 3], sizes = [64, 248], strides = [1, 1]} : vector<64x252xf32> to vector<64x248xf32>
    %19 = vector.extract_strided_slice %14 {offsets = [0, 4], sizes = [64, 248], strides = [1, 1]} : vector<64x252xf32> to vector<64x248xf32>
    %20 = tpu.concatenate %15, %16, %17, %18, %19 in 0 : vector<64x248xf32>, vector<64x248xf32>, vector<64x248xf32>, vector<64x248xf32>, vector<64x248xf32> -> vector<320x248xf32>
    %c0_7 = arith.constant 0 : index
    %c0_8 = arith.constant 0 : index
    %21 = vector.load %arg4[%c0_7, %c0_8] : memref<64x320xf32, #tpu.memory_space<vmem>>, vector<64x320xf32>
    %cst_9 = arith.constant dense<0.000000e+00> : vector<64x248xf32>
    %22 = tpu.matmul %21, %20, %cst_9 {dimension_numbers = #tpu.dot_dimension_numbers<[1], [0], [0], [1], [0, 0, 1, 1], [], []>} : vector<64x320xf32>, vector<320x248xf32>, vector<64x248xf32> -> vector<64x248xf32>
    %c0_10 = arith.constant 0 : index
    %c0_11 = arith.constant 0 : index
    %23 = vector.load %arg5[%c0_10, %c0_11] : memref<64x1xf32, #tpu.memory_space<vmem>>, vector<64x1xf32>
    %24 = vector.broadcast %23 : vector<64x1xf32> to vector<64x248xf32>
    %25 = arith.addf %22, %24 : vector<64x248xf32>
    %cst_12 = arith.constant 0.000000e+00 : f32
    %26 = vector.broadcast %cst_12 : f32 to vector<64x248xf32>
    %27 = arith.maximumf %25, %26 : vector<64x248xf32>
    %28 = vector.extract_strided_slice %27 {offsets = [0, 0], sizes = [64, 244], strides = [1, 1]} : vector<64x248xf32> to vector<64x244xf32>
    %29 = vector.extract_strided_slice %27 {offsets = [0, 1], sizes = [64, 244], strides = [1, 1]} : vector<64x248xf32> to vector<64x244xf32>
    %30 = vector.extract_strided_slice %27 {offsets = [0, 2], sizes = [64, 244], strides = [1, 1]} : vector<64x248xf32> to vector<64x244xf32>
    %31 = vector.extract_strided_slice %27 {offsets = [0, 3], sizes = [64, 244], strides = [1, 1]} : vector<64x248xf32> to vector<64x244xf32>
    %32 = vector.extract_strided_slice %27 {offsets = [0, 4], sizes = [64, 244], strides = [1, 1]} : vector<64x248xf32> to vector<64x244xf32>
    %33 = tpu.concatenate %28, %29, %30, %31, %32 in 0 : vector<64x244xf32>, vector<64x244xf32>, vector<64x244xf32>, vector<64x244xf32>, vector<64x244xf32> -> vector<320x244xf32>
    %c0_13 = arith.constant 0 : index
    %c0_14 = arith.constant 0 : index
    %34 = vector.load %arg6[%c0_13, %c0_14] : memref<64x320xf32, #tpu.memory_space<vmem>>, vector<64x320xf32>
    %cst_15 = arith.constant dense<0.000000e+00> : vector<64x244xf32>
    %35 = tpu.matmul %34, %33, %cst_15 {dimension_numbers = #tpu.dot_dimension_numbers<[1], [0], [0], [1], [0, 0, 1, 1], [], []>} : vector<64x320xf32>, vector<320x244xf32>, vector<64x244xf32> -> vector<64x244xf32>
    %c0_16 = arith.constant 0 : index
    %c0_17 = arith.constant 0 : index
    %36 = vector.load %arg7[%c0_16, %c0_17] : memref<64x1xf32, #tpu.memory_space<vmem>>, vector<64x1xf32>
    %37 = vector.broadcast %36 : vector<64x1xf32> to vector<64x244xf32>
    %38 = arith.addf %35, %37 : vector<64x244xf32>
    %cst_18 = arith.constant 0.000000e+00 : f32
    %39 = vector.broadcast %cst_18 : f32 to vector<64x244xf32>
    %40 = arith.maximumf %38, %39 : vector<64x244xf32>
    %41 = vector.extract_strided_slice %40 {offsets = [0, 0], sizes = [64, 128], strides = [1, 1]} : vector<64x244xf32> to vector<64x128xf32>
    %c0_19 = arith.constant 0 : index
    %c0_20 = arith.constant 0 : index
    %c0_21 = arith.constant 0 : index
    %42 = vector.load %arg8[%c0_19, %c0_20, %c0_21] : memref<1x64x128xf32, #tpu.memory_space<vmem>>, vector<1x64x128xf32>
    %43 = vector.shape_cast %42 : vector<1x64x128xf32> to vector<64x128xf32>
    %44 = vector.shape_cast %41 : vector<64x128xf32> to vector<1x64x128xf32>
    tpu.vector_store %arg8[%c0_19, %c0_20, %c0_21], %44 {strides = array<i32>} : memref<1x64x128xf32, #tpu.memory_space<vmem>>, vector<1x64x128xf32>,
    return
  }
  func.func @transform_0(%arg0: i32) -> (i32, i32, i32) {
    %c0_i32 = arith.constant 0 : i32
    %c0_i32_0 = arith.constant 0 : i32
    %c0_i32_1 = arith.constant 0 : i32
    return %arg0, %c0_i32, %c0_i32_0 : i32, i32, i32
  }
  func.func @transform_1(%arg0: i32) -> (i32, i32) {
    %c0_i32 = arith.constant 0 : i32
    %c0_i32_0 = arith.constant 0 : i32
    %c0_i32_1 = arith.constant 0 : i32
    return %c0_i32, %c0_i32_0 : i32, i32
  }
  func.func @transform_2(%arg0: i32) -> (i32, i32) {
    %c0_i32 = arith.constant 0 : i32
    %c0_i32_0 = arith.constant 0 : i32
    %c0_i32_1 = arith.constant 0 : i32
    return %c0_i32, %c0_i32_0 : i32, i32
  }
  func.func @transform_3(%arg0: i32) -> (i32, i32) {
    %c0_i32 = arith.constant 0 : i32
    %c0_i32_0 = arith.constant 0 : i32
    %c0_i32_1 = arith.constant 0 : i32
    return %c0_i32, %c0_i32_0 : i32, i32
  }
  func.func @transform_4(%arg0: i32) -> (i32, i32) {
    %c0_i32 = arith.constant 0 : i32
    %c0_i32_0 = arith.constant 0 : i32
    %c0_i32_1 = arith.constant 0 : i32
    return %c0_i32, %c0_i32_0 : i32, i32
  }
  func.func @transform_5(%arg0: i32) -> (i32, i32) {
    %c0_i32 = arith.constant 0 : i32
    %c0_i32_0 = arith.constant 0 : i32
    %c0_i32_1 = arith.constant 0 : i32
    return %c0_i32, %c0_i32_0 : i32, i32
  }
  func.func @transform_6(%arg0: i32) -> (i32, i32) {
    %c0_i32 = arith.constant 0 : i32
    %c0_i32_0 = arith.constant 0 : i32
    %c0_i32_1 = arith.constant 0 : i32
    return %c0_i32, %c0_i32_0 : i32, i32
  }
  func.func @transform_7(%arg0: i32) -> (i32, i32, i32) {
    %c0_i32 = arith.constant 0 : i32
    %c0_i32_0 = arith.constant 0 : i32
    %c0_i32_1 = arith.constant 0 : i32
    return %arg0, %c0_i32, %c0_i32_0 : i32, i32, i32
  }
}

module attributes {stable_mosaic.version = 11 : i64} {
  func.func @_mlp_kernel(%arg0: i32, %arg1: memref<2x2048xbf16, #tpu.memory_space<vmem>>, %arg2: memref<2048x128xbf16, #tpu.memory_space<vmem>>, %arg3: memref<1x128xf32, #tpu.memory_space<vmem>>, %arg4: memref<128x10xbf16, #tpu.memory_space<vmem>>, %arg5: memref<1x10xf32, #tpu.memory_space<vmem>>, %arg6: memref<2x10xf32, #tpu.memory_space<vmem>>, %arg7: memref<2x128xf32, #tpu.memory_space<vmem>>) attributes {dimension_semantics = [#tpu.dimension_semantics<arbitrary>], iteration_bounds = array<i64: 4>, scalar_prefetch = 0 : i64, scratch_operands = 1 : i64, tpu.core_type = #tpu.core_type<tc>, window_params = [{transform_indices = @transform_0, window_bounds = array<i64: 2, 2048>}, {transform_indices = @transform_1, window_bounds = array<i64: 2048, 128>}, {pipeline_mode = #tpu.pipeline_mode<synchronous>, transform_indices = @transform_2, window_bounds = array<i64: 1, 128>}, {pipeline_mode = #tpu.pipeline_mode<synchronous>, transform_indices = @transform_3, window_bounds = array<i64: 128, 10>}, {pipeline_mode = #tpu.pipeline_mode<synchronous>, transform_indices = @transform_4, window_bounds = array<i64: 1, 10>}, {pipeline_mode = #tpu.pipeline_mode<synchronous>, transform_indices = @transform_5, window_bounds = array<i64: 2, 10>}]} {
    %c0_i32 = arith.constant 0 : i32
    %0 = arith.cmpi eq, %arg0, %c0_i32 : i32
    %1 = arith.extui %0 : i1 to i32
    %c0_i32_0 = arith.constant 0 : i32
    %2 = arith.cmpi ne, %1, %c0_i32_0 : i32
    scf.if %2 {
      %cst_9 = arith.constant 0.000000e+00 : f32
      %12 = vector.broadcast %cst_9 : f32 to vector<2x128xf32>
      %c0_10 = arith.constant 0 : index
      %c0_11 = arith.constant 0 : index
      %13 = vector.load %arg7[%c0_10, %c0_11] : memref<2x128xf32, #tpu.memory_space<vmem>>, vector<2x128xf32>
      tpu.vector_store %arg7[%c0_10, %c0_11], %12 {strides = array<i32>} : memref<2x128xf32, #tpu.memory_space<vmem>>, vector<2x128xf32>,
    } else {
    }
    %c0 = arith.constant 0 : index
    %c0_1 = arith.constant 0 : index
    %3 = vector.load %arg7[%c0, %c0_1] : memref<2x128xf32, #tpu.memory_space<vmem>>, vector<2x128xf32>
    %c0_2 = arith.constant 0 : index
    %c0_3 = arith.constant 0 : index
    %4 = vector.load %arg1[%c0_2, %c0_3] : memref<2x2048xbf16, #tpu.memory_space<vmem>>, vector<2x2048xbf16>
    %c0_4 = arith.constant 0 : index
    %c0_5 = arith.constant 0 : index
    %5 = vector.load %arg2[%c0_4, %c0_5] : memref<2048x128xbf16, #tpu.memory_space<vmem>>, vector<2048x128xbf16>
    %cst = arith.constant dense<0.000000e+00> : vector<2x128xf32>
    %6 = tpu.matmul %4, %5, %cst {dimension_numbers = #tpu.dot_dimension_numbers<[1], [0], [0], [1], [0, 0, 1, 1], [], []>} : vector<2x2048xbf16>, vector<2048x128xbf16>, vector<2x128xf32> -> vector<2x128xf32>
    %7 = arith.addf %3, %6 : vector<2x128xf32>
    %c0_6 = arith.constant 0 : index
    %c0_7 = arith.constant 0 : index
    %8 = vector.load %arg7[%c0_6, %c0_7] : memref<2x128xf32, #tpu.memory_space<vmem>>, vector<2x128xf32>
    tpu.vector_store %arg7[%c0_6, %c0_7], %7 {strides = array<i32>} : memref<2x128xf32, #tpu.memory_space<vmem>>, vector<2x128xf32>,
    %c3_i32 = arith.constant 3 : i32
    %9 = arith.cmpi eq, %arg0, %c3_i32 : i32
    %10 = arith.extui %9 : i1 to i32
    %c0_i32_8 = arith.constant 0 : i32
    %11 = arith.cmpi ne, %10, %c0_i32_8 : i32
    scf.if %11 {
      %c0_9 = arith.constant 0 : index
      %c0_10 = arith.constant 0 : index
      %12 = vector.load %arg7[%c0_9, %c0_10] : memref<2x128xf32, #tpu.memory_space<vmem>>, vector<2x128xf32>
      %c0_11 = arith.constant 0 : index
      %c0_12 = arith.constant 0 : index
      %13 = vector.load %arg3[%c0_11, %c0_12] : memref<1x128xf32, #tpu.memory_space<vmem>>, vector<1x128xf32>
      %14 = vector.broadcast %13 : vector<1x128xf32> to vector<2x128xf32>
      %15 = arith.addf %12, %14 : vector<2x128xf32>
      %cst_13 = arith.constant 0.000000e+00 : f32
      %16 = vector.broadcast %cst_13 : f32 to vector<2x128xf32>
      %17 = arith.maximumf %15, %16 : vector<2x128xf32>
      %18 = arith.truncf %17 : vector<2x128xf32> to vector<2x128xbf16>
      %c0_14 = arith.constant 0 : index
      %c0_15 = arith.constant 0 : index
      %19 = vector.load %arg4[%c0_14, %c0_15] : memref<128x10xbf16, #tpu.memory_space<vmem>>, vector<128x10xbf16>
      %cst_16 = arith.constant dense<0.000000e+00> : vector<2x10xf32>
      %20 = tpu.matmul %18, %19, %cst_16 {dimension_numbers = #tpu.dot_dimension_numbers<[1], [0], [0], [1], [0, 0, 1, 1], [], []>} : vector<2x128xbf16>, vector<128x10xbf16>, vector<2x10xf32> -> vector<2x10xf32>
      %c0_17 = arith.constant 0 : index
      %c0_18 = arith.constant 0 : index
      %21 = vector.load %arg5[%c0_17, %c0_18] : memref<1x10xf32, #tpu.memory_space<vmem>>, vector<1x10xf32>
      %22 = vector.broadcast %21 : vector<1x10xf32> to vector<2x10xf32>
      %23 = arith.addf %20, %22 : vector<2x10xf32>
      %c0_19 = arith.constant 0 : index
      %c0_20 = arith.constant 0 : index
      %24 = vector.load %arg6[%c0_19, %c0_20] : memref<2x10xf32, #tpu.memory_space<vmem>>, vector<2x10xf32>
      tpu.vector_store %arg6[%c0_19, %c0_20], %23 {strides = array<i32>} : memref<2x10xf32, #tpu.memory_space<vmem>>, vector<2x10xf32>,
    } else {
    }
    return
  }
  func.func @transform_0(%arg0: i32) -> (i32, i32) {
    %c0_i32 = arith.constant 0 : i32
    %c0_i32_0 = arith.constant 0 : i32
    return %c0_i32, %arg0 : i32, i32
  }
  func.func @transform_1(%arg0: i32) -> (i32, i32) {
    %c0_i32 = arith.constant 0 : i32
    %c0_i32_0 = arith.constant 0 : i32
    return %arg0, %c0_i32 : i32, i32
  }
  func.func @transform_2(%arg0: i32) -> (i32, i32) {
    %c0_i32 = arith.constant 0 : i32
    %c0_i32_0 = arith.constant 0 : i32
    %c0_i32_1 = arith.constant 0 : i32
    return %c0_i32, %c0_i32_0 : i32, i32
  }
  func.func @transform_3(%arg0: i32) -> (i32, i32) {
    %c0_i32 = arith.constant 0 : i32
    %c0_i32_0 = arith.constant 0 : i32
    %c0_i32_1 = arith.constant 0 : i32
    return %c0_i32, %c0_i32_0 : i32, i32
  }
  func.func @transform_4(%arg0: i32) -> (i32, i32) {
    %c0_i32 = arith.constant 0 : i32
    %c0_i32_0 = arith.constant 0 : i32
    %c0_i32_1 = arith.constant 0 : i32
    return %c0_i32, %c0_i32_0 : i32, i32
  }
  func.func @transform_5(%arg0: i32) -> (i32, i32) {
    %c0_i32 = arith.constant 0 : i32
    %c0_i32_0 = arith.constant 0 : i32
    %c0_i32_1 = arith.constant 0 : i32
    return %c0_i32, %c0_i32_0 : i32, i32
  }
}

</mosaic_0001>

<bundles_post_ra>
// kernel: rcsnet_forward.2
= control target key start
LH: loop header
LB: loop body
LE: loop exit
PB: predicated region body
PF: predicated region fallthrough
CT: control target
= control target key end

     0   :  { %s1828_s24 = smov 0   ;;  %s2829_s0 = inlined_call_operand.vmem [shape: f32[2,8,256], index: 0, kind: input, shape index: {}]   ;;  %s2830_s1 = inlined_call_operand.vmem [shape: f32[64,40], index: 1, kind: input, shape index: {}]   ;;  %s2831_s2 = inlined_call_operand.vmem [shape: f32[64,1], index: 2, kind: input, shape index: {}]   ;;  %s2832_s3 = inlined_call_operand.vmem [shape: f32[64,320], index: 3, kind: input, shape index: {}]   ;;  %s2833_s4 = inlined_call_operand.vmem [shape: f32[64,1], index: 4, kind: input, shape index: {}]   ;;  %s2834_s5 = inlined_call_operand.vmem [shape: f32[64,320], index: 5, kind: input, shape index: {}]   ;;  %s2835_s6 = inlined_call_operand.vmem [shape: f32[64,1], index: 6, kind: input, shape index: {}]   ;;  %s2836_s7 = inlined_call_operand.vmem [shape: f32[2,64,128], index: 7, kind: output, shape index: {}]  }
   0x1 LB: > { %s1721_s25 = sadd.s32 4294967295, %s1780_s24   ;;  %p1725_p0 = scmp.ge.s32.totalorder %s1780_s24, 1  ;;  %s1780_s24 = sphi %s1828_s24, %s17_s24  }
   0x2   : > { %p237_p1 = scmp.lt.s32.totalorder %s1780_s24, 3 }
   0x4   : > { %p238_p2 = pnand %p1725_p0, %p237_p1 }
   0x5   : > { %p269_p3 = scmp.lt.s32.totalorder (!%p238_p2), %s1721_s25, 1  ;;  %s1782_s30 = smov (!%p238_p2), 125  }
   0x6   : > { %241 = sbr.rel (%p238_p2) target bundleno = 1252 (0x4e4), region = 48  ;;  %s1783_s8 = smov (!%p238_p2), 124  }
   0x7   : > { %s1785_s9 = smov (!%p238_p2), 126   ;;  %s1786_s10 = smov (!%p238_p2), 127  }
   0xb   : > { %s2838_s25 = smov (!%p269_p3, %s1721_s25), 1  ;;  %v1784_v2 = vmov 0.0   ;;  %v330_v3 = vld [vmem:[%s2831_s2 + $0x38] sm:$0xff]  ;;  %v329_v4 = vld [vmem:[%s2831_s2 + $0x30] sm:$0xff]  ;;  %v1787_v5 = vmov 0   ;;  %v327_v6 = vld [vmem:[%s2831_s2 + $0x20] sm:$0xff] }
   0xc   : > { %s1756_s26 = sshll.u32 %s2838_s25, 4  ;;  %460 = vmatprep.mubr.f32.mxu0 %v1784_v2  ;;  %1772 = vset.pattern.permute.xlu0 %v1787_v5  ;;  %v328_v7 = vld [vmem:[%s2831_s2 + $0x28] sm:$0xff]  ;;  %v325_v8 = vld [vmem:[%s2831_s2 + $0x10] sm:$0xff]  ;;  %v326_v9 = vld [vmem:[%s2831_s2 + $0x18] sm:$0xff]  ;;  %vm311_vm0 = vcmask 1014784   ;;  %vm303_vm1 = vcmask 1022976  }
   0xd   : > { %s273_s29 = scalar_lea.vmem %s2829_s0, %s1756_s26  ;;  %1773 = vset.pattern.permute.xlu1 %v1787_v5  ;;  %v323_v10 = vld [vmem:[%s2831_s2] sm:$0xff]  ;;  %v324_v11 = vld [vmem:[%s2831_s2 + $0x8] sm:$0xff]  ;;  %vm295_vm2 = vcmask 1031168   ;;  %vm287_vm3 = vcmask 1039360   ;;  %vm371_vm4 = vcmask 326656   ;;  %v317_v26 = vld [vmem:[%s2830_s1 + $0x10] sm:$0xff] }
   0xe   : > { %v279_v0 = vld [vmem:[%s273_s29] sm:$0xff]  ;;  %v280_v1 = vld [vmem:[%s273_s29 + $0x8] sm:$0xff]  ;;  %v318_v27 = vld [vmem:[%s2830_s1 + $0x18] sm:$0xff]  ;;  %vm837_vm5 = vcmask 523264  }
   0xf   : > { %299 = vrot.lane.b32.xlu1 %v279_v0, %s1782_s30  ;;  %307 = vrot.lane.b32.xlu0 %v279_v0, %s1783_s8  ;;  %v315_v24 = vld [vmem:[%s2830_s1] sm:$0xff]  ;;  %v316_v25 = vld [vmem:[%s2830_s1 + $0x8] sm:$0xff] }
  0x10   : > { %v319_v28 = vld [vmem:[%s2830_s1 + $0x20] sm:$0xff]  ;;  %v320_v29 = vld [vmem:[%s2830_s1 + $0x28] sm:$0xff]  ;;  %v321_v30 = vld [vmem:[%s2830_s1 + $0x30] sm:$0xff] }
  0x11   : > { %v322_v31 = vld [vmem:[%s2830_s1 + $0x38] sm:$0xff] }
  0x13   : > { %301 = vrot.lane.b32.xlu1 %v280_v1, %s1782_s30  ;;  %309 = vrot.lane.b32.xlu0 %v280_v1, %s1783_s8 }
  0x17   : > { %293 = vrot.lane.b32.xlu1 %v280_v1, %s1785_s9  ;;  %291 = vrot.lane.b32.xlu0 %v279_v0, %s1785_s9 }
  0x1b   : > { %285 = vrot.lane.b32.xlu1 %v280_v1, %s1786_s10  ;;  %283 = vrot.lane.b32.xlu0 %v279_v0, %s1786_s10 }
  0x1f   : > { %368 = vperm.xlu0 %1772, %v330_v3   ;;  %363 = vperm.xlu1 %1773, %v329_v4  }
  0x23   : > { %353 = vperm.xlu0 %1772, %v327_v6   ;;  %358 = vperm.xlu1 %1773, %v328_v7  }
  0x27   : > { %343 = vperm.xlu0 %1772, %v325_v8   ;;  %348 = vperm.xlu1 %1773, %v326_v9  }
  0x2b   : > { %333 = vperm.xlu0 %1772, %v323_v10   ;;  %338 = vperm.xlu1 %1773, %v324_v11  }
  0x81   : > { %v300_v12 = vpop.permute.xlu1 %299  ;;  %v308_v13 = vpop.permute.xlu0 %307 }
  0x85   : > { %v302_v14 = vpop.permute.xlu1 %301  ;;  %v310_v15 = vpop.permute.xlu0 %309 }
  0x86   : > { %418 = vmatprep.subr.mxu0 %v310_v15  ;;  %v312_v16 = vsel %vm311_vm0, %v308_v13, %v310_v15  ;;  %v304_v17 = vsel %vm303_vm1, %v300_v12, %v302_v14 }
  0x87   : > { %419 = vmatpush1.msra.mxu0 %v312_v16 }
  0x88   : > { %420 = vmatprep.subr.mxu0 %v302_v14 }
  0x89   : > { %v294_v18 = vpop.permute.xlu1 %293  ;;  %421 = vmatpush1.msra.mxu0 %v304_v17  ;;  %v292_v19 = vpop.permute.xlu0 %291 }
  0x8a   : > { %422 = vmatprep.subr.mxu0 %v294_v18  ;;  %v296_v20 = vsel %vm295_vm2, %v292_v19, %v294_v18 }
  0x8b   : > { %423 = vmatpush1.msra.mxu0 %v296_v20 }
  0x8d   : > { %v286_v21 = vpop.permute.xlu1 %285  ;;  %v284_v22 = vpop.permute.xlu0 %283 }
  0x8e   : > { %424 = vmatprep.subr.mxu0 %v286_v21  ;;  %v288_v23 = vsel %vm287_vm3, %v284_v22, %v286_v21 }
  0x8f   : > { %425 = vmatpush1.msra.mxu0 %v288_v23 }
  0x90   : > { %426 = vmatprep.subr.mxu0 %v280_v1 }
  0x91   : > { %427 = vmatpush1.msra.mxu0 %v279_v0 }
  0x92   : > { %1730 = vmatmul.mubr.msk.f32.vlgmr.msra.gmra.mxu0 %vm371_vm4, %v315_v24 }
  0x93   : > { %466 = vmatprep.mubr.f32.mxu0 %v1784_v2 }
  0x96   : > { %1731 = vmatmul.mubr.msk.f32.gmra.mxu0 %vm371_vm4, %v316_v25  ;;  %v766_v25 = vld [vmem:[%s2832_s3 + $0x8] sm:$0xff] }
  0x97   : > { %472 = vmatprep.mubr.f32.mxu0 %v1784_v2  ;;  %926 = vmatprep.mubr.f32.mxu1 %v766_v25 }
  0x9a   : > { %1732 = vmatmul.mubr.msk.f32.gmra.mxu0 %vm371_vm4, %v317_v26  ;;  %v1919_v32 = vpop.permute.xlu0 %368  ;;  %v1921_v33 = vpop.permute.xlu1 %363 }
  0x9b   : > { %478 = vmatprep.mubr.f32.mxu0 %v1784_v2 }
  0x9e   : > { %1733 = vmatmul.mubr.msk.f32.gmra.mxu0 %vm371_vm4, %v318_v27  ;;  %v354_v34 = vpop.permute.xlu0 %353  ;;  %v359_v35 = vpop.permute.xlu1 %358 }
  0x9f   : > { %484 = vmatprep.mubr.f32.mxu0 %v1784_v2 }
  0xa2   : > { %1734 = vmatmul.mubr.msk.f32.gmra.mxu0 %vm371_vm4, %v319_v28  ;;  %v344_v36 = vpop.permute.xlu0 %343  ;;  %v349_v37 = vpop.permute.xlu1 %348 }
  0xa3   : > { %490 = vmatprep.mubr.f32.mxu0 %v1784_v2 }
  0xa6   : > { %1735 = vmatmul.mubr.msk.f32.gmra.mxu0 %vm371_vm4, %v320_v29  ;;  %v334_v38 = vpop.permute.xlu0 %333  ;;  %v339_v46 = vpop.permute.xlu1 %338 }
  0xa7   : > { %496 = vmatprep.mubr.f32.mxu0 %v1784_v2 }
  0xaa   : > { %1736 = vmatmul.mubr.msk.f32.gmra.mxu0 %vm371_vm4, %v321_v30 }
  0xab   : > { %502 = vmatprep.mubr.f32.mxu0 %v1784_v2 }
  0xae   : > { %1737 = vmatmul.mubr.msk.f32.gmra.mxu0 %vm371_vm4, %v322_v31 }
  0xaf   : > { %1039 = vmatprep.mubr.f32.mxu0 %v1784_v2 }
 0x152   : > { %v462_v39 = vpop.f32.mrf.mxu0 }
 0x153   : > { %v463_v40 = vadd.f32 %v462_v39, %v334_v38 }
 0x154   : > { %v464_v41 = vpop.f32.mrf.mxu0 }
 0x155   : > { %v1923_v42 = vmax.f32 %v463_v40, 0.0  ;;  %v465_v43 = vadd.f32 %v464_v41, %v334_v38  ;;  %v793_v38 = vld [vmem:[%s2833_s4 + $0x20] sm:$0xff]  ;;  %v792_v40 = vld [vmem:[%s2833_s4 + $0x18] sm:$0xff] }
 0x156   : > { %v468_v44 = vpop.f32.mrf.mxu0 }
 0x157   : > { %v1925_v45 = vmax.f32 %v465_v43, 0.0  ;;  %541 = vrot.lane.b32.xlu1 %v1923_v42, %s1786_s10  ;;  %v469_v48 = vadd.f32 %v468_v44, %v339_v46  ;;  %v791_v43 = vld [vmem:[%s2833_s4 + $0x10] sm:$0xff] }
 0x158   : > { %v470_v47 = vpop.f32.mrf.mxu0 }
 0x159   : > { %543 = vrot.lane.b32.xlu0 %v1925_v45, %s1786_s10  ;;  %v471_v49 = vadd.f32 %v470_v47, %v339_v46  ;;  %v1933_v51 = vmax.f32 %v469_v48, 0.0  ;;  %v790_v46 = vld [vmem:[%s2833_s4 + $0x8] sm:$0xff]  ;;  %v789_v48 = vld [vmem:[%s2833_s4] sm:$0xff] }
 0x15a   : > { %v474_v50 = vpop.f32.mrf.mxu0 }
 0x15b   : > { %653 = vrot.lane.b32.xlu1 %v1923_v42, %s1782_s30  ;;  %v1937_v52 = vmax.f32 %v471_v49, 0.0  ;;  %v475_v54 = vadd.f32 %v474_v50, %v344_v36 }
 0x15c   : > { %v476_v53 = vpop.f32.mrf.mxu0 }
 0x15d   : > { %655 = vrot.lane.b32.xlu0 %v1925_v45, %s1782_s30  ;;  %v477_v55 = vadd.f32 %v476_v53, %v344_v36  ;;  %v1945_v57 = vmax.f32 %v475_v54, 0.0  ;;  %v794_v36 = vld [vmem:[%s2833_s4 + $0x28] sm:$0xff] }
 0x15e   : > { %v480_v56 = vpop.f32.mrf.mxu0 }
 0x15f   : > { %545 = vrot.lane.b32.xlu1 %v1933_v51, %s1786_s10  ;;  %v1949_v58 = vmax.f32 %v477_v55, 0.0  ;;  %v481_v60 = vadd.f32 %v480_v56, %v349_v37 }
 0x160   : > { %v482_v59 = vpop.f32.mrf.mxu0 }
 0x161   : > { %547 = vrot.lane.b32.xlu0 %v1937_v52, %s1786_s10  ;;  %v483_v61 = vadd.f32 %v482_v59, %v349_v37  ;;  %v1957_v63 = vmax.f32 %v481_v60, 0.0 }
 0x162   : > { %v486_v62 = vpop.f32.mrf.mxu0 }
 0x163   : > { %657 = vrot.lane.b32.xlu1 %v1933_v51, %s1782_s30  ;;  %v1961_v0 = vmax.f32 %v483_v61, 0.0  ;;  %v487_v3 = vadd.f32 %v486_v62, %v354_v34 }
 0x164   : > { %v488_v1 = vpop.f32.mrf.mxu0 }
 0x165   : > { %659 = vrot.lane.b32.xlu0 %v1937_v52, %s1782_s30  ;;  %v489_v4 = vadd.f32 %v488_v1, %v354_v34  ;;  %v1969_v6 = vmax.f32 %v487_v3, 0.0  ;;  %v795_v34 = vld [vmem:[%s2833_s4 + $0x30] sm:$0xff] }
 0x166   : > { %v492_v5 = vpop.f32.mrf.mxu0 }
 0x167   : > { %549 = vrot.lane.b32.xlu1 %v1945_v57, %s1786_s10  ;;  %v1973_v7 = vmax.f32 %v489_v4, 0.0  ;;  %v493_v9 = vadd.f32 %v492_v5, %v359_v35 }
 0x168   : > { %v494_v8 = vpop.f32.mrf.mxu0 }
 0x169   : > { %551 = vrot.lane.b32.xlu0 %v1949_v58, %s1786_s10  ;;  %v495_v10 = vadd.f32 %v494_v8, %v359_v35  ;;  %v1981_v12 = vmax.f32 %v493_v9, 0.0 }
 0x16a   : > { %v498_v11 = vpop.f32.mrf.mxu0 }
 0x16b   : > { %661 = vrot.lane.b32.xlu1 %v1945_v57, %s1782_s30  ;;  %v1985_v13 = vmax.f32 %v495_v10, 0.0  ;;  %v499_v15 = vadd.f32 %v498_v11, %v1921_v33 }
 0x16c   : > { %v500_v14 = vpop.f32.mrf.mxu0 }
 0x16d   : > { %663 = vrot.lane.b32.xlu0 %v1949_v58, %s1782_s30  ;;  %v501_v16 = vadd.f32 %v500_v14, %v1921_v33  ;;  %v1995_v17 = vmax.f32 %v499_v15, 0.0 }
 0x16e   : > { %v504_v19 = vpop.f32.mrf.mxu0 }
 0x16f   : > { %553 = vrot.lane.b32.xlu1 %v1957_v63, %s1786_s10  ;;  %v1999_v18 = vmax.f32 %v501_v16, 0.0  ;;  %v505_v21 = vadd.f32 %v504_v19, %v1919_v32 }
 0x170   : > { %v506_v20 = vpop.f32.mrf.mxu0 }
 0x171   : > { %555 = vrot.lane.b32.xlu0 %v1961_v0, %s1786_s10  ;;  %v507_v22 = vadd.f32 %v506_v20, %v1919_v32  ;;  %v2013_v23 = vmax.f32 %v505_v21, 0.0  ;;  %v796_v32 = vld [vmem:[%s2833_s4 + $0x38] sm:$0xff] }
 0x173   : > { %665 = vrot.lane.b32.xlu1 %v1957_v63, %s1782_s30  ;;  %v2017_v24 = vmax.f32 %v507_v22, 0.0 }
 0x175   : > { %667 = vrot.lane.b32.xlu0 %v1961_v0, %s1782_s30 }
 0x177   : > { %557 = vrot.lane.b32.xlu1 %v1969_v6, %s1786_s10 }
 0x179   : > { %559 = vrot.lane.b32.xlu0 %v1973_v7, %s1786_s10 }
 0x17b   : > { %669 = vrot.lane.b32.xlu1 %v1969_v6, %s1782_s30 }
 0x17d   : > { %671 = vrot.lane.b32.xlu0 %v1973_v7, %s1782_s30 }
 0x17f   : > { %561 = vrot.lane.b32.xlu1 %v1981_v12, %s1786_s10 }
 0x181   : > { %563 = vrot.lane.b32.xlu0 %v1985_v13, %s1786_s10 }
 0x183   : > { %673 = vrot.lane.b32.xlu1 %v1981_v12, %s1782_s30 }
 0x185   : > { %675 = vrot.lane.b32.xlu0 %v1985_v13, %s1782_s30 }
 0x187   : > { %565 = vrot.lane.b32.xlu1 %v1995_v17, %s1786_s10 }
 0x189   : > { %567 = vrot.lane.b32.xlu0 %v1999_v18, %s1786_s10 }
 0x18b   : > { %677 = vrot.lane.b32.xlu1 %v1995_v17, %s1782_s30 }
 0x18d   : > { %679 = vrot.lane.b32.xlu0 %v1999_v18, %s1782_s30 }
 0x18f   : > { %621 = vrot.lane.b32.xlu1 %v1995_v17, %s1785_s9 }
 0x191   : > { %623 = vrot.lane.b32.xlu0 %v1999_v18, %s1785_s9 }
 0x193   : > { %569 = vrot.lane.b32.xlu1 %v2013_v23, %s1786_s10 }
 0x195   : > { %571 = vrot.lane.b32.xlu0 %v2017_v24, %s1786_s10 }
 0x197   : > { %617 = vrot.lane.b32.xlu1 %v1981_v12, %s1785_s9 }
 0x199   : > { %619 = vrot.lane.b32.xlu0 %v1985_v13, %s1785_s9 }
 0x19b   : > { %681 = vrot.lane.b32.xlu1 %v2013_v23, %s1782_s30 }
 0x19d   : > { %735 = vrot.lane.b32.xlu0 %v1999_v18, %s1783_s8 }
 0x19f   : > { %625 = vrot.lane.b32.xlu1 %v2013_v23, %s1785_s9 }
 0x1a1   : > { %615 = vrot.lane.b32.xlu0 %v1973_v7, %s1785_s9 }
 0x1a3   : > { %737 = vrot.lane.b32.xlu1 %v2013_v23, %s1783_s8 }
 0x1a5   : > { %731 = vrot.lane.b32.xlu0 %v1985_v13, %s1783_s8 }
 0x1a7   : > { %733 = vrot.lane.b32.xlu1 %v1995_v17, %s1783_s8 }
 0x1a9   : > { %611 = vrot.lane.b32.xlu0 %v1961_v0, %s1785_s9 }
 0x1ab   : > { %613 = vrot.lane.b32.xlu1 %v1969_v6, %s1785_s9 }
 0x1ad   : > { %727 = vrot.lane.b32.xlu0 %v1973_v7, %s1783_s8 }
 0x1af   : > { %729 = vrot.lane.b32.xlu1 %v1981_v12, %s1783_s8 }
 0x1b1   : > { %607 = vrot.lane.b32.xlu0 %v1949_v58, %s1785_s9 }
 0x1b3   : > { %609 = vrot.lane.b32.xlu1 %v1957_v63, %s1785_s9 }
 0x1b5   : > { %683 = vrot.lane.b32.xlu0 %v2017_v24, %s1782_s30 }
 0x1b7   : > { %725 = vrot.lane.b32.xlu1 %v1969_v6, %s1783_s8 }
 0x1b9   : > { %723 = vrot.lane.b32.xlu0 %v1961_v0, %s1783_s8 }
 0x1bb   : > { %605 = vrot.lane.b32.xlu1 %v1945_v57, %s1785_s9 }
 0x1bd   : > { %603 = vrot.lane.b32.xlu0 %v1937_v52, %s1785_s9 }
 0x1bf   : > { %721 = vrot.lane.b32.xlu1 %v1957_v63, %s1783_s8 }
 0x1c1   : > { %627 = vrot.lane.b32.xlu0 %v2017_v24, %s1785_s9 }
 0x1c3   : > { %601 = vrot.lane.b32.xlu1 %v1933_v51, %s1785_s9 }
 0x1c5   : > { %739 = vrot.lane.b32.xlu0 %v2017_v24, %s1783_s8 }
 0x1c7   : > { %717 = vrot.lane.b32.xlu1 %v1945_v57, %s1783_s8 }
 0x1c9   : > { %719 = vrot.lane.b32.xlu0 %v1949_v58, %s1783_s8  ;;  %v2078_v26 = vpop.permute.xlu1 %541 }
 0x1cb   : > { %v2080_v27 = vpop.permute.xlu0 %543  ;;  %597 = vrot.lane.b32.xlu1 %v1923_v42, %s1785_s9 }
 0x1cd   : > { %599 = vrot.lane.b32.xlu0 %v1925_v45, %s1785_s9  ;;  %v2086_v28 = vpop.permute.xlu1 %653 }
 0x1cf   : > { %v2088_v29 = vpop.permute.xlu0 %655  ;;  %713 = vrot.lane.b32.xlu1 %v1933_v51, %s1783_s8 }
 0x1d1   : > { %715 = vrot.lane.b32.xlu0 %v1937_v52, %s1783_s8  ;;  %v2094_v30 = vpop.permute.xlu1 %545 }
 0x1d3   : > { %v2096_v31 = vpop.permute.xlu0 %547  ;;  %709 = vrot.lane.b32.xlu1 %v1923_v42, %s1783_s8 }
 0x1d5   : > { %711 = vrot.lane.b32.xlu0 %v1925_v45, %s1783_s8  ;;  %v2105_v33 = vpop.permute.xlu1 %657 }
 0x1d7   : > { %v2110_v35 = vpop.permute.xlu0 %659  ;;  %834 = vperm.xlu1 %1773, %v796_v32  }
 0x1d9   : > { %829 = vperm.xlu0 %1772, %v795_v34   ;;  %v550_v37 = vpop.permute.xlu1 %549 }
 0x1db   : > { %v552_v39 = vpop.permute.xlu0 %551  ;;  %824 = vperm.xlu1 %1773, %v794_v36  }
 0x1dd   : > { %819 = vperm.xlu0 %1772, %v793_v38   ;;  %v2121_v41 = vpop.permute.xlu1 %661  ;;  %v575_v38 = vsel %vm287_vm3, %v550_v37, %v552_v39 }
 0x1df   : > { %v2126_v44 = vpop.permute.xlu0 %663  ;;  %814 = vperm.xlu1 %1773, %v792_v40  }
 0x1e1   : > { %809 = vperm.xlu0 %1772, %v791_v43   ;;  %v554_v47 = vpop.permute.xlu1 %553  ;;  %v574_v43 = vsel %vm287_vm3, %v2094_v30, %v2096_v31 }
 0x1e3   : > { %v556_v49 = vpop.permute.xlu0 %555  ;;  %804 = vperm.xlu1 %1773, %v790_v46  }
 0x1e4   : > { %v576_v34 = vsel %vm287_vm3, %v554_v47, %v556_v49  ;;  %v573_v47 = vsel %vm287_vm3, %v2078_v26, %v2080_v27 }
 0x1e5   : > { %799 = vperm.xlu0 %1772, %v789_v48   ;;  %v2134_v50 = vpop.permute.xlu1 %665 }
 0x1e7   : > { %v2136_v53 = vpop.permute.xlu0 %667 }
 0x1e9   : > { %v558_v54 = vpop.permute.xlu1 %557 }
 0x1eb   : > { %v560_v55 = vpop.permute.xlu0 %559 }
 0x1ec   : > { %v577_v25 = vsel %vm287_vm3, %v558_v54, %v560_v55 }
 0x1ed   : > { %v2138_v56 = vpop.permute.xlu1 %669 }
 0x1ef   : > { %v2140_v59 = vpop.permute.xlu0 %671 }
 0x1f1   : > { %v562_v60 = vpop.permute.xlu1 %561 }
 0x1f3   : > { %v564_v61 = vpop.permute.xlu0 %563 }
 0x1f4   : > { %v578_v21 = vsel %vm287_vm3, %v562_v60, %v564_v61 }
 0x1f5   : > { %v2142_v62 = vpop.permute.xlu1 %673 }
 0x1f7   : > { %v2144_v1 = vpop.permute.xlu0 %675 }
 0x1f9   : > { %v566_v3 = vpop.permute.xlu1 %565 }
 0x1fb   : > { %v568_v4 = vpop.permute.xlu0 %567 }
 0x1fc   : > { %v579_v19 = vsel %vm287_vm3, %v566_v3, %v568_v4 }
 0x1fd   : > { %v2146_v5 = vpop.permute.xlu1 %677 }
 0x1ff   : > { %v2148_v8 = vpop.permute.xlu0 %679 }
 0x201   : > { %v2150_v9 = vpop.permute.xlu1 %621 }
 0x203   : > { %v2152_v10 = vpop.permute.xlu0 %623 }
 0x205   : > { %v570_v11 = vpop.permute.xlu1 %569 }
 0x207   : > { %v572_v14 = vpop.permute.xlu0 %571 }
 0x208   : > { %862 = vmatprep.subr.mxu1 %v572_v14  ;;  %v580_v15 = vsel %vm287_vm3, %v570_v11, %v572_v14  ;;  %v769_v14 = vld [vmem:[%s2832_s3 + $0x20] sm:$0xff] }
 0x209   : > { %863 = vmatpush1.msra.mxu1 %v580_v15  ;;  %v2155_v16 = vpop.permute.xlu1 %617 }
 0x20a   : > { %864 = vmatprep.subr.mxu1 %v568_v4 }
 0x20b   : > { %v2158_v20 = vpop.permute.xlu0 %619  ;;  %865 = vmatpush1.msra.mxu1 %v579_v19  ;;  %v767_v19 = vld [vmem:[%s2832_s3 + $0x10] sm:$0xff] }
 0x20c   : > { %866 = vmatprep.subr.mxu1 %v564_v61  ;;  %v634_v54 = vsel %vm295_vm2, %v2155_v16, %v2158_v20 }
 0x20d   : > { %867 = vmatpush1.msra.mxu1 %v578_v21  ;;  %v682_v22 = vpop.permute.xlu1 %681  ;;  %v768_v21 = vld [vmem:[%s2832_s3 + $0x18] sm:$0xff] }
 0x20e   : > { %868 = vmatprep.subr.mxu1 %v560_v55 }
 0x20f   : > { %v2162_v32 = vpop.permute.xlu0 %735  ;;  %869 = vmatpush1.msra.mxu1 %v577_v25  ;;  %v770_v25 = vld [vmem:[%s2832_s3 + $0x28] sm:$0xff] }
 0x210   : > { %870 = vmatprep.subr.mxu1 %v556_v49  ;;  %v685_v49 = vsel %vm303_vm1, %v2086_v28, %v2088_v29  ;;  %v635_v28 = vsel %vm295_vm2, %v2150_v9, %v2152_v10 }
 0x211   : > { %871 = vmatpush1.msra.mxu1 %v576_v34  ;;  %v2165_v36 = vpop.permute.xlu1 %625  ;;  %v775_v34 = vld [vmem:[%s2832_s3 + $0x50] sm:$0xff] }
 0x212   : > { %872 = vmatprep.subr.mxu1 %v552_v39 }
 0x213   : > { %v2168_v40 = vpop.permute.xlu0 %615  ;;  %873 = vmatpush1.msra.mxu1 %v575_v38  ;;  %v774_v38 = vld [vmem:[%s2832_s3 + $0x48] sm:$0xff] }
 0x214   : > { %874 = vmatprep.subr.mxu1 %v2096_v31 }
 0x215   : > { %875 = vmatpush1.msra.mxu1 %v574_v43  ;;  %v738_v46 = vpop.permute.xlu1 %737  ;;  %v776_v43 = vld [vmem:[%s2832_s3 + $0x58] sm:$0xff] }
 0x216   : > { %876 = vmatprep.subr.mxu1 %v2080_v27  ;;  %v686_v27 = vsel %vm303_vm1, %v2105_v33, %v2110_v35 }
 0x217   : > { %v2178_v48 = vpop.permute.xlu0 %731  ;;  %877 = vmatpush1.msra.mxu1 %v573_v47  ;;  %v781_v47 = vld [vmem:[%s2832_s3 + $0x80] sm:$0xff] }
 0x218   : > { %878 = vmatprep.subr.mxu1 %v2017_v24 }
 0x219   : > { %879 = vmatpush1.msra.mxu1 %v2013_v23  ;;  %v734_v37 = vpop.permute.xlu1 %733  ;;  %v687_v23 = vsel %vm303_vm1, %v2121_v41, %v2126_v44 }
 0x21a   : > { %880 = vmatprep.subr.mxu1 %v1999_v18 }
 0x21b   : > { %v2183_v39 = vpop.permute.xlu0 %611  ;;  %881 = vmatpush1.msra.mxu1 %v1995_v17 }
 0x21c   : > { %882 = vmatprep.subr.mxu1 %v1985_v13 }
 0x21d   : > { %883 = vmatpush1.msra.mxu1 %v1981_v12  ;;  %v2188_v30 = vpop.permute.xlu1 %613  ;;  %v688_v12 = vsel %vm303_vm1, %v2134_v50, %v2136_v53 }
 0x21e   : > { %884 = vmatprep.subr.mxu1 %v1973_v7 }
 0x21f   : > { %v2191_v26 = vpop.permute.xlu0 %727  ;;  %885 = vmatpush1.msra.mxu1 %v1969_v6 }
 0x220   : > { %886 = vmatprep.subr.mxu1 %v1961_v0 }
 0x221   : > { %887 = vmatpush1.msra.mxu1 %v1957_v63  ;;  %v730_v18 = vpop.permute.xlu1 %729 }
 0x222   : > { %888 = vmatprep.subr.mxu1 %v1949_v58 }
 0x223   : > { %v2197_v17 = vpop.permute.xlu0 %607  ;;  %889 = vmatpush1.msra.mxu1 %v1945_v57 }
 0x224   : > { %890 = vmatprep.subr.mxu1 %v1937_v52  ;;  %v691_v52 = vsel %vm303_vm1, %v2146_v5, %v2148_v8 }
 0x225   : > { %891 = vmatpush1.msra.mxu1 %v1933_v51  ;;  %v2202_v7 = vpop.permute.xlu1 %609  ;;  %v689_v51 = vsel %vm303_vm1, %v2138_v56, %v2140_v59 }
 0x226   : > { %892 = vmatprep.subr.mxu1 %v1925_v45  ;;  %v690_v45 = vsel %vm303_vm1, %v2142_v62, %v2144_v1  ;;  %v632_v62 = vsel %vm295_vm2, %v2202_v7, %v2183_v39  ;;  %v786_v7 = vld [vmem:[%s2832_s3 + $0xa8] sm:$0xff] }
 0x227   : > { %v684_v6 = vpop.permute.xlu0 %683  ;;  %893 = vmatpush1.msra.mxu1 %v1923_v42 }
 0x228   : > { %894 = vmatprep.subr.mxu1 %v684_v6  ;;  %v692_v63 = vsel %vm303_vm1, %v682_v22, %v684_v6  ;;  %v772_v22 = vld [vmem:[%s2832_s3 + $0x38] sm:$0xff] }
 0x229   : > { %895 = vmatpush2.msra.mxu1 %v692_v63  ;;  %v726_v58 = vpop.permute.xlu1 %725  ;;  %v788_v6 = vld [vmem:[%s2832_s3 + $0xb8] sm:$0xff] }
 0x22a   : > { %896 = vmatprep.subr.mxu1 %v2148_v8  ;;  %v745_v56 = vsel %vm311_vm0, %v726_v58, %v2191_v26 }
 0x22b   : > { %v724_v57 = vpop.permute.xlu0 %723  ;;  %897 = vmatpush2.msra.mxu1 %v691_v52 }
 0x22c   : > { %898 = vmatprep.subr.mxu1 %v2144_v1 }
 0x22d   : > { %899 = vmatpush2.msra.mxu1 %v690_v45  ;;  %v606_v42 = vpop.permute.xlu1 %605 }
 0x22e   : > { %900 = vmatprep.subr.mxu1 %v2140_v59  ;;  %v633_v59 = vsel %vm295_vm2, %v2188_v30, %v2168_v40  ;;  %v631_v4 = vsel %vm295_vm2, %v606_v42, %v2197_v17  ;;  %v782_v30 = vld [vmem:[%s2832_s3 + $0x88] sm:$0xff] }
 0x22f   : > { %v2219_v0 = vpop.permute.xlu0 %603  ;;  %901 = vmatpush2.msra.mxu1 %v689_v51 }
 0x230   : > { %902 = vmatprep.subr.mxu1 %v2136_v53  ;;  %v746_v53 = vsel %vm311_vm0, %v730_v18, %v2178_v48  ;;  %v787_v18 = vld [vmem:[%s2832_s3 + $0xb0] sm:$0xff] }
 0x231   : > { %903 = vmatpush2.msra.mxu1 %v688_v12  ;;  %v722_v13 = vpop.permute.xlu1 %721 }
 0x232   : > { %904 = vmatprep.subr.mxu1 %v2126_v44  ;;  %v744_v61 = vsel %vm311_vm0, %v722_v13, %v724_v57 }
 0x233   : > { %v628_v24 = vpop.permute.xlu0 %627  ;;  %905 = vmatpush2.msra.mxu1 %v687_v23 }
 0x234   : > { %906 = vmatprep.subr.mxu1 %v2110_v35  ;;  %v636_v44 = vsel %vm295_vm2, %v2165_v36, %v628_v24  ;;  %v747_v35 = vsel %vm311_vm0, %v734_v37, %v2162_v32  ;;  %v773_v36 = vld [vmem:[%s2832_s3 + $0x40] sm:$0xff]  ;;  %v780_v37 = vld [vmem:[%s2832_s3 + $0x78] sm:$0xff] }
 0x235   : > { %907 = vmatpush2.msra.mxu1 %v686_v27  ;;  %v602_v31 = vpop.permute.xlu1 %601 }
 0x236   : > { %908 = vmatprep.subr.mxu1 %v2088_v29  ;;  %v630_v9 = vsel %vm295_vm2, %v602_v31, %v2219_v0 }
 0x237   : > { %v740_v50 = vpop.permute.xlu0 %739  ;;  %909 = vmatpush2.msra.mxu1 %v685_v49 }
 0x238   : > { %v748_v41 = vsel %vm311_vm0, %v738_v46, %v740_v50  ;;  %910 = vmatprep.subr.mxu1 %v628_v24  ;;  %991 = vmatprep.subr.mxu0 %v740_v50  ;;  %v777_v46 = vld [vmem:[%s2832_s3 + $0x60] sm:$0xff] }
 0x239   : > { %911 = vmatpush2.msra.mxu1 %v636_v44  ;;  %992 = vmatpush1.msra.mxu0 %v748_v41  ;;  %v718_v33 = vpop.permute.xlu1 %717 }
 0x23a   : > { %912 = vmatprep.subr.mxu1 %v2152_v10  ;;  %993 = vmatprep.subr.mxu0 %v2162_v32  ;;  %v765_v10 = vld [vmem:[%s2832_s3] sm:$0xff]  ;;  %v771_v32 = vld [vmem:[%s2832_s3 + $0x30] sm:$0xff] }
 0x23b   : > { %v720_v29 = vpop.permute.xlu0 %719  ;;  %913 = vmatpush2.msra.mxu1 %v635_v28  ;;  %994 = vmatpush1.msra.mxu0 %v747_v35 }
 0x23c   : > { %914 = vmatprep.subr.mxu1 %v2158_v20  ;;  %995 = vmatprep.subr.mxu0 %v2178_v48  ;;  %v743_v3 = vsel %vm311_vm0, %v718_v33, %v720_v29  ;;  %v779_v48 = vld [vmem:[%s2832_s3 + $0x70] sm:$0xff] }
 0x23d   : > { %915 = vmatpush2.msra.mxu1 %v634_v54  ;;  %996 = vmatpush1.msra.mxu0 %v746_v53  ;;  %v598_v55 = vpop.permute.xlu1 %597 }
 0x23e   : > { %916 = vmatprep.subr.mxu1 %v2168_v40  ;;  %997 = vmatprep.subr.mxu0 %v2191_v26  ;;  %v778_v40 = vld [vmem:[%s2832_s3 + $0x68] sm:$0xff]  ;;  %v783_v26 = vld [vmem:[%s2832_s3 + $0x90] sm:$0xff] }
 0x23f   : > { %v600_v60 = vpop.permute.xlu0 %599  ;;  %917 = vmatpush2.msra.mxu1 %v633_v59  ;;  %998 = vmatpush1.msra.mxu0 %v745_v56 }
 0x240   : > { %918 = vmatprep.subr.mxu1 %v2183_v39  ;;  %999 = vmatprep.subr.mxu0 %v724_v57  ;;  %v629_v11 = vsel %vm295_vm2, %v598_v55, %v600_v60  ;;  %v784_v39 = vld [vmem:[%s2832_s3 + $0x98] sm:$0xff] }
 0x241   : > { %919 = vmatpush2.msra.mxu1 %v632_v62  ;;  %1000 = vmatpush1.msra.mxu0 %v744_v61  ;;  %v714_v1 = vpop.permute.xlu1 %713 }
 0x242   : > { %920 = vmatprep.subr.mxu1 %v2197_v17  ;;  %1001 = vmatprep.subr.mxu0 %v720_v29  ;;  %v785_v17 = vld [vmem:[%s2832_s3 + $0xa0] sm:$0xff] }
 0x243   : > { %v716_v5 = vpop.permute.xlu0 %715  ;;  %921 = vmatpush2.msra.mxu1 %v631_v4  ;;  %1002 = vmatpush1.msra.mxu0 %v743_v3 }
 0x244   : > { %v742_v8 = vsel %vm311_vm0, %v714_v1, %v716_v5  ;;  %922 = vmatprep.subr.mxu1 %v2219_v0  ;;  %1003 = vmatprep.subr.mxu0 %v716_v5 }
 0x245   : > { %923 = vmatpush2.msra.mxu1 %v630_v9  ;;  %1004 = vmatpush1.msra.mxu0 %v742_v8  ;;  %v710_v15 = vpop.permute.xlu1 %709 }
 0x246   : > { %924 = vmatprep.subr.mxu1 %v600_v60 }
 0x247   : > { %v712_v16 = vpop.permute.xlu0 %711  ;;  %925 = vmatpush2.msra.mxu1 %v629_v11 }
 0x248   : > { %v741_v20 = vsel %vm311_vm0, %v710_v15, %v712_v16  ;;  %927 = vmatmul.mubr.f32.vlgmr.msra.gmra.mxu1 %v765_v10  ;;  %1005 = vmatprep.subr.mxu0 %v712_v16 }
 0x249   : > { %1006 = vmatpush1.msra.mxu0 %v741_v20  ;;  %932 = vmatprep.mubr.f32.mxu1 %v769_v14 }
 0x24a   : > { %1738 = vmatmul.mubr.msk.f32.vlgmr.msra.gmra.mxu0 %vm837_vm5, %v767_v19 }
 0x24b   : > { %1045 = vmatprep.mubr.f32.mxu0 %v1784_v2 }
 0x24c   : > { %933 = vmatmul.mubr.f32.gmra.mxu1 %v768_v21 }
 0x24d   : > { %938 = vmatprep.mubr.f32.mxu1 %v772_v22 }
 0x24e   : > { %1739 = vmatmul.mubr.msk.f32.gmra.mxu0 %vm837_vm5, %v770_v25 }
 0x24f   : > { %1051 = vmatprep.mubr.f32.mxu0 %v1784_v2 }
 0x250   : > { %939 = vmatmul.mubr.f32.gmra.mxu1 %v771_v32 }
 0x251   : > { %944 = vmatprep.mubr.f32.mxu1 %v775_v34 }
 0x252   : > { %1740 = vmatmul.mubr.msk.f32.gmra.mxu0 %vm837_vm5, %v773_v36  ;;  %v2363_v58 = vpop.permute.xlu1 %834 }
 0x253   : > { %1057 = vmatprep.mubr.f32.mxu0 %v1784_v2 }
 0x254   : > { %945 = vmatmul.mubr.f32.gmra.mxu1 %v774_v38  ;;  %v2361_v63 = vpop.permute.xlu0 %829 }
 0x255   : > { %950 = vmatprep.mubr.f32.mxu1 %v778_v40 }
 0x256   : > { %1741 = vmatmul.mubr.msk.f32.gmra.mxu0 %vm837_vm5, %v776_v43  ;;  %v2365_v57 = vpop.permute.xlu1 %824 }
 0x257   : > { %1063 = vmatprep.mubr.f32.mxu0 %v1784_v2 }
 0x258   : > { %951 = vmatmul.mubr.f32.gmra.mxu1 %v777_v46  ;;  %v820_v52 = vpop.permute.xlu0 %819 }
 0x259   : > { %956 = vmatprep.mubr.f32.mxu1 %v781_v47 }
 0x25a   : > { %1742 = vmatmul.mubr.msk.f32.gmra.mxu0 %vm837_vm5, %v779_v48  ;;  %v815_v42 = vpop.permute.xlu1 %814 }
 0x25b   : > { %1069 = vmatprep.mubr.f32.mxu0 %v1784_v2 }
 0x25c   : > { %957 = vmatmul.mubr.f32.gmra.mxu1 %v780_v37  ;;  %v810_v45 = vpop.permute.xlu0 %809 }
 0x25d   : > { %962 = vmatprep.mubr.f32.mxu1 %v784_v39 }
 0x25e   : > { %1743 = vmatmul.mubr.msk.f32.gmra.mxu0 %vm837_vm5, %v782_v30  ;;  %v805_v24 = vpop.permute.xlu1 %804 }
 0x25f   : > { %1075 = vmatprep.mubr.f32.mxu0 %v1784_v2 }
 0x260   : > { %963 = vmatmul.mubr.f32.gmra.mxu1 %v783_v26  ;;  %v800_v51 = vpop.permute.xlu0 %799 }
 0x261   : > { %968 = vmatprep.mubr.f32.mxu1 %v787_v18 }
 0x262   : > { %1744 = vmatmul.mubr.msk.f32.gmra.mxu0 %vm837_vm5, %v785_v17 }
 0x263   : > { %1081 = vmatprep.mubr.f32.mxu0 %v1784_v2 }
 0x264   : > { %969 = vmatmul.mubr.f32.gmra.mxu1 %v786_v7 }
 0x265   : > { %1609 = vmatprep.mubr.f32.mxu1 %v1784_v2 }
 0x266   : > { %1745 = vmatmul.mubr.msk.f32.gmra.mxu0 %vm837_vm5, %v788_v6 }
 0x308   : > { %v928_v0 = vpop.f32.mrf.mxu1 }
 0x309   : > { %v929_v12 = vadd.f32 %v928_v0, %v800_v51 }
 0x30a   : > { %v930_v13 = vpop.f32.mrf.mxu1  ;;  %v1041_v23 = vpop.f32.mrf.mxu0 }
 0x30b   : > { %v931_v27 = vadd.f32 %v930_v13, %v800_v51  ;;  %v1042_v31 = vadd.f32 %v1041_v23, %v929_v12 }
 0x30c   : > { %v934_v49 = vpop.f32.mrf.mxu1  ;;  %v1043_v50 = vpop.f32.mrf.mxu0 }
 0x30d   : > { %v2367_v41 = vmax.f32 %v1042_v31, 0.0  ;;  %v935_v44 = vadd.f32 %v934_v49, %v805_v24  ;;  %v1044_v33 = vadd.f32 %v1043_v50, %v931_v27 }
 0x30e   : > { %v936_v35 = vpop.f32.mrf.mxu1  ;;  %v1047_v28 = vpop.f32.mrf.mxu0 }
 0x30f   : > { %v2369_v29 = vmax.f32 %v1044_v33, 0.0  ;;  %v937_v53 = vadd.f32 %v936_v35, %v805_v24  ;;  %1120 = vrot.lane.b32.xlu1 %v2367_v41, %s1786_s10  ;;  %v1048_v56 = vadd.f32 %v1047_v28, %v935_v44 }
 0x310   : > { %v940_v54 = vpop.f32.mrf.mxu1  ;;  %v1049_v55 = vpop.f32.mrf.mxu0 }
 0x311   : > { %1122 = vrot.lane.b32.xlu0 %v2369_v29, %s1786_s10  ;;  %v1050_v59 = vadd.f32 %v1049_v55, %v937_v53  ;;  %v2377_v62 = vmax.f32 %v1048_v56, 0.0  ;;  %v941_v1 = vadd.f32 %v940_v54, %v810_v45 }
 0x312   : > { %v942_v60 = vpop.f32.mrf.mxu1  ;;  %v1053_v61 = vpop.f32.mrf.mxu0 }
 0x313   : > { %1232 = vrot.lane.b32.xlu1 %v2367_v41, %s1782_s30  ;;  %v2381_v3 = vmax.f32 %v1050_v59, 0.0  ;;  %v943_v4 = vadd.f32 %v942_v60, %v810_v45  ;;  %v1054_v9 = vadd.f32 %v1053_v61, %v941_v1 }
 0x314   : > { %v946_v5 = vpop.f32.mrf.mxu1  ;;  %v1055_v8 = vpop.f32.mrf.mxu0 }
 0x315   : > { %1234 = vrot.lane.b32.xlu0 %v2369_v29, %s1782_s30  ;;  %v1056_v10 = vadd.f32 %v1055_v8, %v943_v4  ;;  %v2389_v15 = vmax.f32 %v1054_v9, 0.0  ;;  %v947_v16 = vadd.f32 %v946_v5, %v815_v42 }
 0x316   : > { %v948_v11 = vpop.f32.mrf.mxu1  ;;  %v1059_v14 = vpop.f32.mrf.mxu0 }
 0x317   : > { %1124 = vrot.lane.b32.xlu1 %v2377_v62, %s1786_s10  ;;  %v2393_v19 = vmax.f32 %v1056_v10, 0.0  ;;  %v949_v20 = vadd.f32 %v948_v11, %v815_v42  ;;  %v1060_v25 = vadd.f32 %v1059_v14, %v947_v16  ;;  %v1368_v11 = vld [vmem:[%s2835_s6] sm:$0xff]  ;;  %v1369_v16 = vld [vmem:[%s2835_s6 + $0x8] sm:$0xff] }
 0x318   : > { %v952_v21 = vpop.f32.mrf.mxu1  ;;  %v1061_v22 = vpop.f32.mrf.mxu0 }
 0x319   : > { %1126 = vrot.lane.b32.xlu0 %v2381_v3, %s1786_s10  ;;  %v1062_v32 = vadd.f32 %v1061_v22, %v949_v20  ;;  %v2401_v38 = vmax.f32 %v1060_v25, 0.0  ;;  %v953_v40 = vadd.f32 %v952_v21, %v820_v52  ;;  %v1370_v21 = vld [vmem:[%s2835_s6 + $0x10] sm:$0xff]  ;;  %v1371_v25 = vld [vmem:[%s2835_s6 + $0x18] sm:$0xff] }
 0x31a   : > { %v954_v34 = vpop.f32.mrf.mxu1  ;;  %v1065_v36 = vpop.f32.mrf.mxu0 }
 0x31b   : > { %1236 = vrot.lane.b32.xlu1 %v2377_v62, %s1782_s30  ;;  %v2405_v43 = vmax.f32 %v1062_v32, 0.0  ;;  %v955_v46 = vadd.f32 %v954_v34, %v820_v52  ;;  %v1066_v37 = vadd.f32 %v1065_v36, %v953_v40  ;;  %v1372_v34 = vld [vmem:[%s2835_s6 + $0x20] sm:$0xff]  ;;  %v1373_v40 = vld [vmem:[%s2835_s6 + $0x28] sm:$0xff] }
 0x31c   : > { %v958_v47 = vpop.f32.mrf.mxu1  ;;  %v1067_v48 = vpop.f32.mrf.mxu0 }
 0x31d   : > { %1238 = vrot.lane.b32.xlu0 %v2381_v3, %s1782_s30  ;;  %v1068_v39 = vadd.f32 %v1067_v48, %v955_v46  ;;  %v2413_v18 = vmax.f32 %v1066_v37, 0.0  ;;  %v959_v17 = vadd.f32 %v958_v47, %v2365_v57  ;;  %v1374_v47 = vld [vmem:[%s2835_s6 + $0x30] sm:$0xff]  ;;  %v1375_v37 = vld [vmem:[%s2835_s6 + $0x38] sm:$0xff] }
 0x31e   : > { %v960_v30 = vpop.f32.mrf.mxu1  ;;  %v1071_v26 = vpop.f32.mrf.mxu0 }
 0x31f   : > { %1128 = vrot.lane.b32.xlu1 %v2389_v15, %s1786_s10  ;;  %v2418_v7 = vmax.f32 %v1068_v39, 0.0  ;;  %v961_v6 = vadd.f32 %v960_v30, %v2365_v57  ;;  %v1072_v42 = vadd.f32 %v1071_v26, %v959_v17 }
 0x320   : > { %v964_v52 = vpop.f32.mrf.mxu1  ;;  %v1073_v45 = vpop.f32.mrf.mxu0 }
 0x321   : > { %1130 = vrot.lane.b32.xlu0 %v2393_v19, %s1786_s10  ;;  %v1074_v51 = vadd.f32 %v1073_v45, %v961_v6  ;;  %v2427_v13 = vmax.f32 %v1072_v42, 0.0  ;;  %v965_v23 = vadd.f32 %v964_v52, %v2361_v63 }
 0x322   : > { %v966_v0 = vpop.f32.mrf.mxu1  ;;  %v1077_v12 = vpop.f32.mrf.mxu0 }
 0x323   : > { %1240 = vrot.lane.b32.xlu1 %v2389_v15, %s1782_s30  ;;  %v2432_v57 = vmax.f32 %v1074_v51, 0.0  ;;  %v967_v24 = vadd.f32 %v966_v0, %v2361_v63  ;;  %v1078_v31 = vadd.f32 %v1077_v12, %v965_v23 }
 0x324   : > { %v1079_v27 = vpop.f32.mrf.mxu0  ;;  %v970_v50 = vpop.f32.mrf.mxu1 }
 0x325   : > { %1242 = vrot.lane.b32.xlu0 %v2393_v19, %s1782_s30  ;;  %v1080_v49 = vadd.f32 %v1079_v27, %v967_v24  ;;  %v2441_v44 = vmax.f32 %v1078_v31, 0.0  ;;  %v971_v28 = vadd.f32 %v970_v50, %v2363_v58 }
 0x326   : > { %v972_v63 = vpop.f32.mrf.mxu1  ;;  %v1083_v35 = vpop.f32.mrf.mxu0 }
 0x327   : > { %1132 = vrot.lane.b32.xlu1 %v2401_v38, %s1786_s10  ;;  %v2445_v33 = vmax.f32 %v1080_v49, 0.0  ;;  %v973_v53 = vadd.f32 %v972_v63, %v2363_v58  ;;  %v1084_v55 = vadd.f32 %v1083_v35, %v971_v28  ;;  %v1345_v58 = vld [vmem:[%s2834_s5 + $0x8] sm:$0xff] }
 0x328   : > { %v1085_v54 = vpop.f32.mrf.mxu0  ;;  %1504 = vmatprep.mubr.f32.mxu0 %v1345_v58 }
 0x329   : > { %1134 = vrot.lane.b32.xlu0 %v2405_v43, %s1786_s10  ;;  %v1086_v56 = vadd.f32 %v1085_v54, %v973_v53  ;;  %v2459_v59 = vmax.f32 %v1084_v55, 0.0 }
 0x32b   : > { %1244 = vrot.lane.b32.xlu1 %v2401_v38, %s1782_s30  ;;  %v2463_v60 = vmax.f32 %v1086_v56, 0.0 }
 0x32d   : > { %1246 = vrot.lane.b32.xlu0 %v2405_v43, %s1782_s30 }
 0x32f   : > { %1136 = vrot.lane.b32.xlu1 %v2413_v18, %s1786_s10 }
 0x331   : > { %1138 = vrot.lane.b32.xlu0 %v2418_v7, %s1786_s10 }
 0x333   : > { %1248 = vrot.lane.b32.xlu1 %v2413_v18, %s1782_s30 }
 0x335   : > { %1250 = vrot.lane.b32.xlu0 %v2418_v7, %s1782_s30 }
 0x337   : > { %1140 = vrot.lane.b32.xlu1 %v2427_v13, %s1786_s10 }
 0x339   : > { %1142 = vrot.lane.b32.xlu0 %v2432_v57, %s1786_s10 }
 0x33b   : > { %1252 = vrot.lane.b32.xlu1 %v2427_v13, %s1782_s30 }
 0x33d   : > { %1254 = vrot.lane.b32.xlu0 %v2432_v57, %s1782_s30 }
 0x33f   : > { %1144 = vrot.lane.b32.xlu1 %v2441_v44, %s1786_s10 }
 0x341   : > { %1146 = vrot.lane.b32.xlu0 %v2445_v33, %s1786_s10 }
 0x343   : > { %1256 = vrot.lane.b32.xlu1 %v2441_v44, %s1782_s30 }
 0x345   : > { %1258 = vrot.lane.b32.xlu0 %v2445_v33, %s1782_s30 }
 0x347   : > { %1200 = vrot.lane.b32.xlu1 %v2441_v44, %s1785_s9 }
 0x349   : > { %1202 = vrot.lane.b32.xlu0 %v2445_v33, %s1785_s9 }
 0x34b   : > { %1148 = vrot.lane.b32.xlu1 %v2459_v59, %s1786_s10 }
 0x34d   : > { %1150 = vrot.lane.b32.xlu0 %v2463_v60, %s1786_s10  ;;  %s1757_s10 = sshll.u32 %s2838_s25, 6 }
 0x34e   : > { %s2816_s23 = scalar_lea.vmem %s2836_s7, %s1757_s10 }
 0x34f   : > { %1196 = vrot.lane.b32.xlu1 %v2427_v13, %s1785_s9 }
 0x351   : > { %1198 = vrot.lane.b32.xlu0 %v2432_v57, %s1785_s9 }
 0x353   : > { %1260 = vrot.lane.b32.xlu1 %v2459_v59, %s1782_s30 }
 0x355   : > { %1314 = vrot.lane.b32.xlu0 %v2445_v33, %s1783_s8 }
 0x357   : > { %1204 = vrot.lane.b32.xlu1 %v2459_v59, %s1785_s9 }
 0x359   : > { %1194 = vrot.lane.b32.xlu0 %v2418_v7, %s1785_s9 }
 0x35b   : > { %1316 = vrot.lane.b32.xlu1 %v2459_v59, %s1783_s8 }
 0x35d   : > { %1310 = vrot.lane.b32.xlu0 %v2432_v57, %s1783_s8 }
 0x35f   : > { %1312 = vrot.lane.b32.xlu1 %v2441_v44, %s1783_s8 }
 0x361   : > { %1190 = vrot.lane.b32.xlu0 %v2405_v43, %s1785_s9 }
 0x363   : > { %1192 = vrot.lane.b32.xlu1 %v2413_v18, %s1785_s9 }
 0x365   : > { %1306 = vrot.lane.b32.xlu0 %v2418_v7, %s1783_s8 }
 0x367   : > { %1308 = vrot.lane.b32.xlu1 %v2427_v13, %s1783_s8 }
 0x369   : > { %1186 = vrot.lane.b32.xlu0 %v2393_v19, %s1785_s9 }
 0x36b   : > { %1188 = vrot.lane.b32.xlu1 %v2401_v38, %s1785_s9 }
 0x36d   : > { %1262 = vrot.lane.b32.xlu0 %v2463_v60, %s1782_s30 }
 0x36f   : > { %1304 = vrot.lane.b32.xlu1 %v2413_v18, %s1783_s8 }
 0x371   : > { %1302 = vrot.lane.b32.xlu0 %v2405_v43, %s1783_s8 }
 0x373   : > { %1184 = vrot.lane.b32.xlu1 %v2389_v15, %s1785_s9 }
 0x375   : > { %1182 = vrot.lane.b32.xlu0 %v2381_v3, %s1785_s9 }
 0x377   : > { %1300 = vrot.lane.b32.xlu1 %v2401_v38, %s1783_s8 }
 0x379   : > { %1206 = vrot.lane.b32.xlu0 %v2463_v60, %s1785_s9 }
 0x37b   : > { %1180 = vrot.lane.b32.xlu1 %v2377_v62, %s1785_s9 }
 0x37d   : > { %1318 = vrot.lane.b32.xlu0 %v2463_v60, %s1783_s8 }
 0x37f   : > { %1296 = vrot.lane.b32.xlu1 %v2389_v15, %s1783_s8 }
 0x381   : > { %1298 = vrot.lane.b32.xlu0 %v2393_v19, %s1783_s8  ;;  %v2524_v61 = vpop.permute.xlu1 %1120 }
 0x383   : > { %v2526_v1 = vpop.permute.xlu0 %1122  ;;  %1176 = vrot.lane.b32.xlu1 %v2367_v41, %s1785_s9 }
 0x385   : > { %1178 = vrot.lane.b32.xlu0 %v2369_v29, %s1785_s9  ;;  %v2532_v4 = vpop.permute.xlu1 %1232 }
 0x387   : > { %v2534_v5 = vpop.permute.xlu0 %1234  ;;  %1292 = vrot.lane.b32.xlu1 %v2377_v62, %s1783_s8 }
 0x389   : > { %1294 = vrot.lane.b32.xlu0 %v2381_v3, %s1783_s8  ;;  %v1125_v8 = vpop.permute.xlu1 %1124 }
 0x38b   : > { %v2540_v9 = vpop.permute.xlu0 %1126  ;;  %1288 = vrot.lane.b32.xlu1 %v2367_v41, %s1783_s8 }
 0x38c   : > { %v2546_v10 = vsel %vm287_vm3, %v1125_v8, %v2540_v9 }
 0x38d   : > { %1290 = vrot.lane.b32.xlu0 %v2369_v29, %s1783_s8  ;;  %v2553_v14 = vpop.permute.xlu1 %1236 }
 0x38f   : > { %v2558_v20 = vpop.permute.xlu0 %1238  ;;  %1378 = vperm.xlu1 %1773, %v1368_v11  }
 0x391   : > { %1383 = vperm.xlu0 %1772, %v1369_v16   ;;  %v1129_v22 = vpop.permute.xlu1 %1128 }
 0x393   : > { %v1131_v32 = vpop.permute.xlu0 %1130  ;;  %1388 = vperm.xlu1 %1773, %v1370_v21  }
 0x395   : > { %1393 = vperm.xlu0 %1772, %v1371_v25   ;;  %v2569_v36 = vpop.permute.xlu1 %1240  ;;  %v1154_v25 = vsel %vm287_vm3, %v1129_v22, %v1131_v32 }
 0x397   : > { %v2574_v46 = vpop.permute.xlu0 %1242  ;;  %1398 = vperm.xlu1 %1773, %v1372_v34  }
 0x399   : > { %1403 = vperm.xlu0 %1772, %v1373_v40   ;;  %v1133_v48 = vpop.permute.xlu1 %1132 }
 0x39b   : > { %v1135_v39 = vpop.permute.xlu0 %1134  ;;  %1408 = vperm.xlu1 %1773, %v1374_v47   ;;  %v1152_v47 = vsel %vm287_vm3, %v2524_v61, %v2526_v1 }
 0x39c   : > { %v1155_v16 = vsel %vm287_vm3, %v1133_v48, %v1135_v39 }
 0x39d   : > { %1413 = vperm.xlu0 %1772, %v1375_v37   ;;  %v2582_v30 = vpop.permute.xlu1 %1244  ;;  %v1264_v37 = vsel %vm303_vm1, %v2532_v4, %v2534_v5 }
 0x39f   : > { %v2584_v26 = vpop.permute.xlu0 %1246 }
 0x3a1   : > { %v1137_v17 = vpop.permute.xlu1 %1136 }
 0x3a3   : > { %v1139_v6 = vpop.permute.xlu0 %1138 }
 0x3a4   : > { %v1156_v8 = vsel %vm287_vm3, %v1137_v17, %v1139_v6 }
 0x3a5   : > { %v2586_v52 = vpop.permute.xlu1 %1248 }
 0x3a7   : > { %v2588_v45 = vpop.permute.xlu0 %1250 }
 0x3a9   : > { %v1141_v42 = vpop.permute.xlu1 %1140 }
 0x3ab   : > { %v1143_v51 = vpop.permute.xlu0 %1142 }
 0x3ac   : > { %v1157_v56 = vsel %vm287_vm3, %v1141_v42, %v1143_v51 }
 0x3ad   : > { %v2590_v0 = vpop.permute.xlu1 %1252 }
 0x3af   : > { %v2592_v12 = vpop.permute.xlu0 %1254 }
 0x3b1   : > { %v1145_v23 = vpop.permute.xlu1 %1144 }
 0x3b3   : > { %v1147_v24 = vpop.permute.xlu0 %1146 }
 0x3b4   : > { %v1158_v54 = vsel %vm287_vm3, %v1145_v23, %v1147_v24 }
 0x3b5   : > { %v2594_v27 = vpop.permute.xlu1 %1256 }
 0x3b7   : > { %v2596_v31 = vpop.permute.xlu0 %1258 }
 0x3b9   : > { %v2598_v49 = vpop.permute.xlu1 %1200 }
 0x3bb   : > { %v2600_v50 = vpop.permute.xlu0 %1202 }
 0x3bd   : > { %v1149_v63 = vpop.permute.xlu1 %1148 }
 0x3bf   : > { %v1151_v35 = vpop.permute.xlu0 %1150 }
 0x3c0   : > { %v1159_v28 = vsel %vm287_vm3, %v1149_v63, %v1151_v35  ;;  %1440 = vmatprep.subr.mxu0 %v1151_v35  ;;  %v1348_v63 = vld [vmem:[%s2834_s5 + $0x20] sm:$0xff] }
 0x3c1   : > { %1441 = vmatpush1.msra.mxu0 %v1159_v28  ;;  %v2603_v53 = vpop.permute.xlu1 %1196 }
 0x3c2   : > { %1442 = vmatprep.subr.mxu0 %v1147_v24 }
 0x3c3   : > { %v2606_v55 = vpop.permute.xlu0 %1198  ;;  %1443 = vmatpush1.msra.mxu0 %v1158_v54 }
 0x3c4   : > { %1444 = vmatprep.subr.mxu0 %v1143_v51 }
 0x3c5   : > { %1445 = vmatpush1.msra.mxu0 %v1157_v56  ;;  %v1261_v58 = vpop.permute.xlu1 %1260  ;;  %v1351_v56 = vld [vmem:[%s2834_s5 + $0x38] sm:$0xff] }
 0x3c6   : > { %1446 = vmatprep.subr.mxu0 %v1139_v6 }
 0x3c7   : > { %v2610_v11 = vpop.permute.xlu0 %1314  ;;  %1447 = vmatpush1.msra.mxu0 %v1156_v8  ;;  %v1350_v8 = vld [vmem:[%s2834_s5 + $0x30] sm:$0xff] }
 0x3c8   : > { %1448 = vmatprep.subr.mxu0 %v1135_v39 }
 0x3c9   : > { %1449 = vmatpush1.msra.mxu0 %v1155_v16  ;;  %v2613_v21 = vpop.permute.xlu1 %1204  ;;  %v1352_v16 = vld [vmem:[%s2834_s5 + $0x40] sm:$0xff] }
 0x3ca   : > { %1450 = vmatprep.subr.mxu0 %v1131_v32 }
 0x3cb   : > { %v2616_v34 = vpop.permute.xlu0 %1194  ;;  %1451 = vmatpush1.msra.mxu0 %v1154_v25  ;;  %v1357_v25 = vld [vmem:[%s2834_s5 + $0x68] sm:$0xff] }
 0x3cc   : > { %1452 = vmatprep.subr.mxu0 %v2540_v9 }
 0x3cd   : > { %1453 = vmatpush1.msra.mxu0 %v2546_v10  ;;  %v2620_v40 = vpop.permute.xlu1 %1316  ;;  %v1265_v10 = vsel %vm303_vm1, %v2553_v14, %v2558_v20 }
 0x3ce   : > { %1454 = vmatprep.subr.mxu0 %v2526_v1 }
 0x3cf   : > { %v2626_v48 = vpop.permute.xlu0 %1310  ;;  %1455 = vmatpush1.msra.mxu0 %v1152_v47  ;;  %v1360_v47 = vld [vmem:[%s2834_s5 + $0x80] sm:$0xff] }
 0x3d0   : > { %1456 = vmatprep.subr.mxu0 %v2463_v60 }
 0x3d1   : > { %1457 = vmatpush1.msra.mxu0 %v2459_v59  ;;  %v2630_v22 = vpop.permute.xlu1 %1312  ;;  %v1266_v59 = vsel %vm303_vm1, %v2569_v36, %v2574_v46 }
 0x3d2   : > { %1458 = vmatprep.subr.mxu0 %v2445_v33  ;;  %v1326_v4 = vsel %vm311_vm0, %v2630_v22, %v2610_v11  ;;  %v1359_v22 = vld [vmem:[%s2834_s5 + $0x78] sm:$0xff] }
 0x3d3   : > { %v2633_v9 = vpop.permute.xlu0 %1190  ;;  %1459 = vmatpush1.msra.mxu0 %v2441_v44 }
 0x3d4   : > { %1460 = vmatprep.subr.mxu0 %v2432_v57 }
 0x3d5   : > { %1461 = vmatpush1.msra.mxu0 %v2427_v13  ;;  %v2638_v61 = vpop.permute.xlu1 %1192  ;;  %v1267_v13 = vsel %vm303_vm1, %v2582_v30, %v2584_v26  ;;  %v1213_v30 = vsel %vm295_vm2, %v2603_v53, %v2606_v55  ;;  %v1346_v53 = vld [vmem:[%s2834_s5 + $0x10] sm:$0xff] }
 0x3d6   : > { %1462 = vmatprep.subr.mxu0 %v2418_v7  ;;  %v1212_v6 = vsel %vm295_vm2, %v2638_v61, %v2616_v34  ;;  %v1361_v61 = vld [vmem:[%s2834_s5 + $0x88] sm:$0xff] }
 0x3d7   : > { %v2641_v1 = vpop.permute.xlu0 %1306  ;;  %1463 = vmatpush1.msra.mxu0 %v2413_v18 }
 0x3d8   : > { %1464 = vmatprep.subr.mxu0 %v2405_v43 }
 0x3d9   : > { %1465 = vmatpush1.msra.mxu0 %v2401_v38  ;;  %v1309_v33 = vpop.permute.xlu1 %1308 }
 0x3da   : > { %1466 = vmatprep.subr.mxu0 %v2393_v19 }
 0x3db   : > { %v2647_v44 = vpop.permute.xlu0 %1186  ;;  %1467 = vmatpush1.msra.mxu0 %v2389_v15  ;;  %v1270_v15 = vsel %vm303_vm1, %v2594_v27, %v2596_v31 }
 0x3dc   : > { %1468 = vmatprep.subr.mxu0 %v2381_v3 }
 0x3dd   : > { %1469 = vmatpush1.msra.mxu0 %v2377_v62  ;;  %v2652_v7 = vpop.permute.xlu1 %1188  ;;  %v1268_v62 = vsel %vm303_vm1, %v2586_v52, %v2588_v45 }
 0x3de   : > { %1470 = vmatprep.subr.mxu0 %v2369_v29  ;;  %v1269_v29 = vsel %vm303_vm1, %v2590_v0, %v2592_v12  ;;  %v1211_v42 = vsel %vm295_vm2, %v2652_v7, %v2633_v9  ;;  %v1365_v7 = vld [vmem:[%s2834_s5 + $0xa8] sm:$0xff] }
 0x3df   : > { %v1263_v18 = vpop.permute.xlu0 %1262  ;;  %1471 = vmatpush1.msra.mxu0 %v2367_v41 }
 0x3e0   : > { %v1271_v38 = vsel %vm303_vm1, %v1261_v58, %v1263_v18  ;;  %1472 = vmatprep.subr.mxu0 %v1263_v18  ;;  %v1349_v58 = vld [vmem:[%s2834_s5 + $0x28] sm:$0xff]  ;;  %v1367_v18 = vld [vmem:[%s2834_s5 + $0xb8] sm:$0xff] }
 0x3e1   : > { %1473 = vmatpush2.msra.mxu0 %v1271_v38  ;;  %v1305_v19 = vpop.permute.xlu1 %1304 }
 0x3e2   : > { %1474 = vmatprep.subr.mxu0 %v2596_v31  ;;  %v1324_v52 = vsel %vm311_vm0, %v1305_v19, %v2641_v1 }
 0x3e3   : > { %v1303_v3 = vpop.permute.xlu0 %1302  ;;  %1475 = vmatpush2.msra.mxu0 %v1270_v15 }
 0x3e4   : > { %1476 = vmatprep.subr.mxu0 %v2592_v12 }
 0x3e5   : > { %1477 = vmatpush2.msra.mxu0 %v1269_v29  ;;  %v1185_v41 = vpop.permute.xlu1 %1184 }
 0x3e6   : > { %1478 = vmatprep.subr.mxu0 %v2588_v45  ;;  %v1210_v12 = vsel %vm295_vm2, %v1185_v41, %v2647_v44 }
 0x3e7   : > { %v2669_v43 = vpop.permute.xlu0 %1182  ;;  %1479 = vmatpush2.msra.mxu0 %v1268_v62 }
 0x3e8   : > { %1480 = vmatprep.subr.mxu0 %v2584_v26  ;;  %v1325_v26 = vsel %vm311_vm0, %v1309_v33, %v2626_v48  ;;  %v1366_v33 = vld [vmem:[%s2834_s5 + $0xb0] sm:$0xff] }
 0x3e9   : > { %1481 = vmatpush2.msra.mxu0 %v1267_v13  ;;  %v1301_v57 = vpop.permute.xlu1 %1300 }
 0x3ea   : > { %1482 = vmatprep.subr.mxu0 %v2574_v46  ;;  %v1323_v51 = vsel %vm311_vm0, %v1301_v57, %v1303_v3 }
 0x3eb   : > { %v1207_v60 = vpop.permute.xlu0 %1206  ;;  %1483 = vmatpush2.msra.mxu0 %v1266_v59 }
 0x3ec   : > { %1484 = vmatprep.subr.mxu0 %v2558_v20  ;;  %v1215_v36 = vsel %vm295_vm2, %v2613_v21, %v1207_v60  ;;  %v1214_v20 = vsel %vm295_vm2, %v2598_v49, %v2600_v50  ;;  %v1344_v49 = vld [vmem:[%s2834_s5] sm:$0xff]  ;;  %v1353_v21 = vld [vmem:[%s2834_s5 + $0x48] sm:$0xff] }
 0x3ed   : > { %1485 = vmatpush2.msra.mxu0 %v1265_v10  ;;  %v1181_v32 = vpop.permute.xlu1 %1180 }
 0x3ee   : > { %1486 = vmatprep.subr.mxu0 %v2534_v5  ;;  %v1209_v27 = vsel %vm295_vm2, %v1181_v32, %v2669_v43 }
 0x3ef   : > { %v1319_v39 = vpop.permute.xlu0 %1318  ;;  %1487 = vmatpush2.msra.mxu0 %v1264_v37 }
 0x3f0   : > { %v1327_v46 = vsel %vm311_vm0, %v2620_v40, %v1319_v39  ;;  %1488 = vmatprep.subr.mxu0 %v1207_v60  ;;  %1561 = vmatprep.subr.mxu1 %v1319_v39  ;;  %v1356_v40 = vld [vmem:[%s2834_s5 + $0x60] sm:$0xff] }
 0x3f1   : > { %1489 = vmatpush2.msra.mxu0 %v1215_v36  ;;  %1562 = vmatpush1.msra.mxu1 %v1327_v46  ;;  %v1297_v14 = vpop.permute.xlu1 %1296 }
 0x3f2   : > { %1490 = vmatprep.subr.mxu0 %v2600_v50  ;;  %1563 = vmatprep.subr.mxu1 %v2610_v11  ;;  %v1354_v11 = vld [vmem:[%s2834_s5 + $0x50] sm:$0xff] }
 0x3f3   : > { %v1299_v5 = vpop.permute.xlu0 %1298  ;;  %1491 = vmatpush2.msra.mxu0 %v1214_v20  ;;  %1564 = vmatpush1.msra.mxu1 %v1326_v4 }
 0x3f4   : > { %1492 = vmatprep.subr.mxu0 %v2606_v55  ;;  %1565 = vmatprep.subr.mxu1 %v2626_v48  ;;  %v1322_v23 = vsel %vm311_vm0, %v1297_v14, %v1299_v5  ;;  %v1347_v55 = vld [vmem:[%s2834_s5 + $0x18] sm:$0xff]  ;;  %v1358_v48 = vld [vmem:[%s2834_s5 + $0x70] sm:$0xff] }
 0x3f5   : > { %1493 = vmatpush2.msra.mxu0 %v1213_v30  ;;  %1566 = vmatpush1.msra.mxu1 %v1325_v26  ;;  %v1177_v17 = vpop.permute.xlu1 %1176 }
 0x3f6   : > { %1494 = vmatprep.subr.mxu0 %v2616_v34  ;;  %1567 = vmatprep.subr.mxu1 %v2641_v1  ;;  %v1355_v34 = vld [vmem:[%s2834_s5 + $0x58] sm:$0xff]  ;;  %v1362_v1 = vld [vmem:[%s2834_s5 + $0x90] sm:$0xff] }
 0x3f7   : > { %v1179_v45 = vpop.permute.xlu0 %1178  ;;  %1495 = vmatpush2.msra.mxu0 %v1212_v6  ;;  %1568 = vmatpush1.msra.mxu1 %v1324_v52 }
 0x3f8   : > { %1496 = vmatprep.subr.mxu0 %v2633_v9  ;;  %1569 = vmatprep.subr.mxu1 %v1303_v3  ;;  %v1208_v50 = vsel %vm295_vm2, %v1177_v17, %v1179_v45  ;;  %v1363_v9 = vld [vmem:[%s2834_s5 + $0x98] sm:$0xff] }
 0x3f9   : > { %1497 = vmatpush2.msra.mxu0 %v1211_v42  ;;  %1570 = vmatpush1.msra.mxu1 %v1323_v51  ;;  %v1293_v0 = vpop.permute.xlu1 %1292 }
 0x3fa   : > { %1498 = vmatprep.subr.mxu0 %v2647_v44  ;;  %1571 = vmatprep.subr.mxu1 %v1299_v5  ;;  %v1364_v44 = vld [vmem:[%s2834_s5 + $0xa0] sm:$0xff] }
 0x3fb   : > { %v1295_v24 = vpop.permute.xlu0 %1294  ;;  %1499 = vmatpush2.msra.mxu0 %v1210_v12  ;;  %1572 = vmatpush1.msra.mxu1 %v1322_v23 }
 0x3fc   : > { %v1321_v31 = vsel %vm311_vm0, %v1293_v0, %v1295_v24  ;;  %1500 = vmatprep.subr.mxu0 %v2669_v43  ;;  %1573 = vmatprep.subr.mxu1 %v1295_v24 }
 0x3fd   : > { %1501 = vmatpush2.msra.mxu0 %v1209_v27  ;;  %1574 = vmatpush1.msra.mxu1 %v1321_v31  ;;  %v1289_v35 = vpop.permute.xlu1 %1288 }
 0x3fe   : > { %1502 = vmatprep.subr.mxu0 %v1179_v45 }
 0x3ff   : > { %v1291_v28 = vpop.permute.xlu0 %1290  ;;  %1503 = vmatpush2.msra.mxu0 %v1208_v50 }
 0x400   : > { %v1320_v54 = vsel %vm311_vm0, %v1289_v35, %v1291_v28  ;;  %1505 = vmatmul.mubr.f32.vlgmr.msra.gmra.mxu0 %v1344_v49  ;;  %1575 = vmatprep.subr.mxu1 %v1291_v28 }
 0x401   : > { %1576 = vmatpush1.msra.mxu1 %v1320_v54  ;;  %1509 = vmatprep.mubr.f32.mxu0 %v1348_v63 }
 0x402   : > { %1746 = vmatmul.mubr.msk.f32.vlgmr.msra.gmra.mxu1 %vm837_vm5, %v1346_v53 }
 0x403   : > { %1614 = vmatprep.mubr.f32.mxu1 %v1784_v2 }
 0x404   : > { %1510 = vmatmul.mubr.f32.gmra.mxu0 %v1347_v55 }
 0x405   : > { %1514 = vmatprep.mubr.f32.mxu0 %v1351_v56 }
 0x406   : > { %1747 = vmatmul.mubr.msk.f32.gmra.mxu1 %vm837_vm5, %v1349_v58 }
 0x407   : > { %1619 = vmatprep.mubr.f32.mxu1 %v1784_v2 }
 0x408   : > { %1515 = vmatmul.mubr.f32.gmra.mxu0 %v1350_v8 }
 0x409   : > { %1519 = vmatprep.mubr.f32.mxu0 %v1354_v11 }
 0x40a   : > { %1748 = vmatmul.mubr.msk.f32.gmra.mxu1 %vm837_vm5, %v1352_v16  ;;  %v1379_v38 = vpop.permute.xlu1 %1378 }
 0x40b   : > { %1624 = vmatprep.mubr.f32.mxu1 %v1784_v2 }
 0x40c   : > { %1520 = vmatmul.mubr.f32.gmra.mxu0 %v1353_v21  ;;  %v1384_v41 = vpop.permute.xlu0 %1383 }
 0x40d   : > { %1524 = vmatprep.mubr.f32.mxu0 %v1357_v25 }
 0x40e   : > { %1749 = vmatmul.mubr.msk.f32.gmra.mxu1 %vm837_vm5, %v1355_v34  ;;  %v1389_v10 = vpop.permute.xlu1 %1388 }
 0x40f   : > { %1629 = vmatprep.mubr.f32.mxu1 %v1784_v2 }
 0x410   : > { %1525 = vmatmul.mubr.f32.gmra.mxu0 %v1356_v40  ;;  %v1394_v4 = vpop.permute.xlu0 %1393 }
 0x411   : > { %1529 = vmatprep.mubr.f32.mxu0 %v1360_v47 }
 0x412   : > { %1750 = vmatmul.mubr.msk.f32.gmra.mxu1 %vm837_vm5, %v1358_v48  ;;  %v1399_v42 = vpop.permute.xlu1 %1398 }
 0x413   : > { %1634 = vmatprep.mubr.f32.mxu1 %v1784_v2 }
 0x414   : > { %1530 = vmatmul.mubr.f32.gmra.mxu0 %v1359_v22  ;;  %v1404_v49 = vpop.permute.xlu0 %1403 }
 0x415   : > { %1534 = vmatprep.mubr.f32.mxu0 %v1363_v9 }
 0x416   : > { %1751 = vmatmul.mubr.msk.f32.gmra.mxu1 %vm837_vm5, %v1361_v61  ;;  %v1409_v56 = vpop.permute.xlu1 %1408 }
 0x417   : > { %1639 = vmatprep.mubr.f32.mxu1 %v1784_v2 }
 0x418   : > { %1535 = vmatmul.mubr.f32.gmra.mxu0 %v1362_v1  ;;  %v1414_v40 = vpop.permute.xlu0 %1413 }
 0x419   : > { %1539 = vmatprep.mubr.f32.mxu0 %v1366_v33 }
 0x41a   : > { %1752 = vmatmul.mubr.msk.f32.gmra.mxu1 %vm837_vm5, %v1364_v44 }
 0x41b   : > { %1644 = vmatprep.mubr.f32.mxu1 %v1784_v2 }
 0x41c   : > { %1540 = vmatmul.mubr.f32.gmra.mxu0 %v1365_v7 }
 0x41e   : > { %1753 = vmatmul.mubr.msk.f32.gmra.mxu1 %vm837_vm5, %v1367_v18 }
 0x4c0   : > { %v1506_v19 = vpop.f32.mrf.mxu0 }
 0x4c1   : > { %v1507_v15 = vadd.f32 %v1506_v19, %v1379_v38 }
 0x4c2   : > { %v1508_v3 = vpop.f32.mrf.mxu0  ;;  %v1611_v29 = vpop.f32.mrf.mxu1 }
 0x4c3   : > { %v1612_v62 = vadd.f32 %v1611_v29, %v1507_v15 }
 0x4c4   : > { %v1511_v2 = vpop.f32.mrf.mxu0  ;;  %v1613_v43 = vpop.f32.mrf.mxu1 }
 0x4c5   : > { %v1650_v13 = vmax.f32 %v1612_v62, 0.0  ;;  %v1512_v57 = vadd.f32 %v1511_v2, %v1384_v41 }
 0x4c6   : > { %v1513_v59 = vpop.f32.mrf.mxu0  ;;  %v1616_v60 = vpop.f32.mrf.mxu1 }
 0x4c7   : > { %1658 = vst [vmem:[%s2816_s23] sm:$0xff] %v1650_v13  ;;  %v1617_v32 = vadd.f32 %v1616_v60, %v1512_v57 }
 0x4c8   : > { %v1516_v37 = vpop.f32.mrf.mxu0  ;;  %v1618_v39 = vpop.f32.mrf.mxu1 }
 0x4c9   : > { %v1651_v36 = vmax.f32 %v1617_v32, 0.0  ;;  %v1517_v46 = vadd.f32 %v1516_v37, %v1389_v10 }
 0x4ca   : > { %v1518_v14 = vpop.f32.mrf.mxu0  ;;  %v1621_v20 = vpop.f32.mrf.mxu1 }
 0x4cb   : > { %1659 = vst [vmem:[%s2816_s23 + $0x8] sm:$0xff] %v1651_v36  ;;  %v1622_v5 = vadd.f32 %v1621_v20, %v1517_v46 }
 0x4cc   : > { %v1521_v30 = vpop.f32.mrf.mxu0  ;;  %v1623_v26 = vpop.f32.mrf.mxu1 }
 0x4cd   : > { %v1652_v17 = vmax.f32 %v1622_v5, 0.0  ;;  %v1522_v6 = vadd.f32 %v1521_v30, %v1394_v4 }
 0x4ce   : > { %v1523_v52 = vpop.f32.mrf.mxu0  ;;  %v1626_v45 = vpop.f32.mrf.mxu1 }
 0x4cf   : > { %1660 = vst [vmem:[%s2816_s23 + $0x10] sm:$0xff] %v1652_v17  ;;  %v1627_v51 = vadd.f32 %v1626_v45, %v1522_v6 }
 0x4d0   : > { %v1526_v0 = vpop.f32.mrf.mxu0  ;;  %v1628_v12 = vpop.f32.mrf.mxu1 }
 0x4d1   : > { %v1653_v23 = vmax.f32 %v1627_v51, 0.0  ;;  %v1527_v24 = vadd.f32 %v1526_v0, %v1399_v42 }
 0x4d2   : > { %v1528_v27 = vpop.f32.mrf.mxu0  ;;  %v1631_v31 = vpop.f32.mrf.mxu1 }
 0x4d3   : > { %1661 = vst [vmem:[%s2816_s23 + $0x18] sm:$0xff] %v1653_v23  ;;  %v1632_v50 = vadd.f32 %v1631_v31, %v1527_v24 }
 0x4d4   : > { %v1531_v63 = vpop.f32.mrf.mxu0  ;;  %v1633_v35 = vpop.f32.mrf.mxu1 }
 0x4d5   : > { %v1654_v28 = vmax.f32 %v1632_v50, 0.0  ;;  %v1532_v53 = vadd.f32 %v1531_v63, %v1404_v49 }
 0x4d6   : > { %v1533_v54 = vpop.f32.mrf.mxu0  ;;  %v1636_v55 = vpop.f32.mrf.mxu1 }
 0x4d7   : > { %1662 = vst [vmem:[%s2816_s23 + $0x20] sm:$0xff] %v1654_v28  ;;  %v1637_v58 = vadd.f32 %v1636_v55, %v1532_v53 }
 0x4d8   : > { %v1536_v8 = vpop.f32.mrf.mxu0  ;;  %v1638_v11 = vpop.f32.mrf.mxu1 }
 0x4d9   : > { %v1655_v16 = vmax.f32 %v1637_v58, 0.0  ;;  %v1537_v21 = vadd.f32 %v1536_v8, %v1409_v56 }
 0x4da   : > { %v1538_v25 = vpop.f32.mrf.mxu0  ;;  %v1641_v34 = vpop.f32.mrf.mxu1 }
 0x4db   : > { %1663 = vst [vmem:[%s2816_s23 + $0x28] sm:$0xff] %v1655_v16  ;;  %v1642_v47 = vadd.f32 %v1641_v34, %v1537_v21 }
 0x4dc   : > { %v1541_v48 = vpop.f32.mrf.mxu0  ;;  %v1643_v22 = vpop.f32.mrf.mxu1 }
 0x4dd   : > { %v1656_v9 = vmax.f32 %v1642_v47, 0.0  ;;  %v1542_v61 = vadd.f32 %v1541_v48, %v1414_v40 }
 0x4de   : > { %v1646_v1 = vpop.f32.mrf.mxu1  ;;  %v1543_v33 = vpop.f32.mrf.mxu0 }
 0x4df   : > { %1664 = vst [vmem:[%s2816_s23 + $0x30] sm:$0xff] %v1656_v9  ;;  %v1647_v44 = vadd.f32 %v1646_v1, %v1542_v61 }
 0x4e0   : > { %v1648_v7 = vpop.f32.mrf.mxu1 }
 0x4e1   : > { %v1657_v18 = vmax.f32 %v1647_v44, 0.0 }
 0x4e3   : > { %1665 = vst [vmem:[%s2816_s23 + $0x38] sm:$0xff] %v1657_v18 }
 0x4e4 PF: > { %s17_s24 = sadd.s32 1, %s1780_s24  }
 0x4e5   : > { %p14_p4 = scmp.ge.s32.totalorder %s17_s24, 4  }
 0x4e7   :  { %16 = sbr.rel (!%p14_p4) target bundleno = 1 (0x1), region = 78 }

// kernel: rcsnet_forward.3
= control target key start
LH: loop header
LB: loop body
LE: loop exit
PB: predicated region body
PF: predicated region fallthrough
CT: control target
= control target key end

     0   :  { %10 = vsyncpa [#allocation4], 0  ;;  %s3066_s0 = inlined_call_operand.vmem [shape: bf16[2,8192], index: 0, kind: input, shape index: {}]   ;;  %s3067_s1 = inlined_call_operand.hbm [shape: bf16[8192,128], index: 1, kind: input, shape index: {}]   ;;  %s3068_s2 = inlined_call_operand.hbm [shape: f32[1,128], index: 2, kind: input, shape index: {}]   ;;  %s3069_s3 = inlined_call_operand.vmem [shape: bf16[128,10], index: 3, kind: input, shape index: {}]   ;;  %s3070_s4 = inlined_call_operand.hbm [shape: f32[1,10], index: 4, kind: input, shape index: {}]   ;;  %s3071_s5 = inlined_call_operand.hbm [shape: f32[2,10], index: 5, kind: output, shape index: {}]  }
   0x1   :  { %12 = vsyncpa [#allocation4 + $0x1], 0 }
   0x2   :  { %13 = vsyncpa [#allocation7], 0 }
   0x3   :  { %14 = vsyncpa [#allocation5], 0  ;;  %s2722_s18 = smov 0   ;;  %s2724_s19 = smov 0  }
   0x4   :  { %s2726_s20 = smov 0   ;;  %s2728_s21 = smov 0  }
   0x5 LB: > { %s2741_s22 = sadd.s32 4294967295, %s2680_s21   ;;  %s2744_s23 = sadd.s32 1, %s2680_s21   ;;  %s2680_s21 = sphi %s2728_s21, %s3088_s21   ;;  %s2676_s20 = sphi %s2726_s20, %s3087_s20   ;;  %s2672_s19 = sphi %s2724_s19, %s3086_s19   ;;  %s2668_s18 = sphi %s2722_s18, %s3085_s18  }
   0x6   : > { %s50_s24 = ssub.s32 %s2680_s21, %s2744_s23  ;;  %s53_s25 = sadd.s32 1, %s2676_s20 }
   0x7   : > { %p51_p0 = scmp.eq.s32.totalorder %s50_s24, 0  ;;  %p60_p1 = scmp.ne.s32.totalorder %s2676_s20, %s2672_s19 }
   0x8   : > { %p61_p2 = scmp.eq.s32.totalorder %s2680_s21, 0  ;;  %p66_p3 = scmp.ne.s32.totalorder %s2672_s19, %s2668_s18 }
   0x9   : > { %s2754_s26 = scalar_select %p51_p0, %s2676_s20, %s53_s25  }
   0xa   : > { %p2756_p4 = por %p61_p2, %p60_p1  ;;  %p3072_p5 = scmp.eq.s32.totalorder %s2741_s22, 0 }
   0xb   : > { %p1961_p6 = scmp.ge.s32.totalorder %s2680_s21, 1  ;;  %p161_p7 = scmp.lt.s32.totalorder %s2680_s21, 5 }
   0xc   : > { %p2765_p8 = por %p3072_p5, %p66_p3  ;;  %s2682_s30 = smov [#allocation6]  }
   0xd   : > { %p2770_p10 = pnand %p1961_p6, %p161_p7  ;;  %s174_s6 = sshll.u32 %s2682_s30, 4  ;;  %s175_s6 = int_to_ptr.vmem [resolvable:$true] %s174_s6 }
   0xe   : > { %s3076_s28 = scalar_select %p2765_p8, 1, 0 }
   0xf   : > { %s3077_s29 = scalar_select %p2770_p10, 1, 0 }
  0x10   : > { %p2337_p11 = pneg %p2770_p10  ;;  %p2350_p12 = scmp.lt.s32.totalorder %s2680_s21, 4 }
  0x11   : > { %s2683_s8 = smov [#allocation8]   ;;  %s207_s11 = sand.u32 1, %s2676_s20  }
  0x12   : > { %p2779_p13 = pnand %p2337_p11, %p3072_p5  ;;  %s188_s9 = sshll.u32 %s2683_s8, 4  ;;  %s189_s9 = int_to_ptr.vmem [resolvable:$true] %s188_s9 }
  0x13   : > { %p2785_p0 = pnand %p2350_p12, %p2756_p4  ;;  %s2545_s12 = scalar_lea.vmem %s175_s6, 16 }
  0x14   : > { %p2536_p1 = pneg %p2779_p13  ;;  %p2546_p2 = scmp.ne.s32.totalorder %s175_s6, %s2545_s12 }
  0x15   : > { %s2552_s13 = scalar_lea.vmem %s175_s6, 32  ;;  %p2553_p7 = scmp.lt.s32.totalorder %s175_s6, %s175_s6 }
  0x16   : > { %p2548_p3 = pnand %p2546_p2, %p2536_p1  ;;  %p2554_p11 = scmp.lt.s32.totalorder %s2552_s13, %s2545_s12 }
  0x18   : > { %p2549_p6 = pneg %p2548_p3  ;;  %p2555_p9 = por %p2554_p11, %p2553_p7 }
  0x1a   : > { %p2556_p5 = pnand %p2555_p9, %p2549_p6 }
  0x1c   : > { %2559 = shalt.err (!%p2556_p5)
}
  0x1d   : > { %2340 = dma.hbm_to_vmem [thread:$0]  (!%p2779_p13), %s3068_s2, 16, %s175_s6, [#allocation7]  }
  0x1e   : > { %s2571_s16 = scalar_lea.vmem %s189_s9, 16  ;;  %s2578_s17 = scalar_lea.vmem %s189_s9, 32 }
  0x1f   : > { %p2572_p4 = scmp.ne.s32.totalorder %s189_s9, %s2571_s16  ;;  %p2579_p3 = scmp.lt.s32.totalorder %s189_s9, %s189_s9 }
  0x20   : > { %p2580_p8 = scmp.lt.s32.totalorder %s2578_s17, %s2571_s16 }
  0x21   : > { %p2574_p12 = pnand %p2572_p4, %p2536_p1 }
  0x22   : > { %p2581_p10 = por %p2580_p8, %p2579_p3 }
  0x23   : > { %p2575_p2 = pneg %p2574_p12 }
  0x25   : > { %p2582_p7 = pnand %p2581_p10, %p2575_p2 }
  0x27   : > { %2585 = shalt.err (!%p2582_p7)
}
  0x28   : > { %2343 = dma.hbm_to_vmem [thread:$0]  (!%p2779_p13), %s3070_s4, 16, %s189_s9, [#allocation7]  }
  0x29   : > { %s1965_s25 = sshll.u32 %s207_s11, 10  ;;  %s2117_s27 = sshll.u32 %s2680_s21, 14 }
  0x2a   : > { %s2814_s8 = scalar_lea.hbm %s3067_s1, %s2117_s27  ;;  %s211_s7 = scalar_lea.vmem [#allocation3], %s1965_s25 }
  0x2b   : > { %s218_s12 = sshll.u32 %s211_s7, 4  ;;  %s2820_s13 = scalar_lea.sflag [#allocation4], %s207_s11  ;;  %s2816_s12 = int_to_ptr.vmem [resolvable:$true] %s218_s12 }
  0x2c   : > { %s2586_s14 = scalar_lea.hbm %s2814_s8, 16384  ;;  %p2588_p8 = pneg %p2785_p0 }
  0x2d   : > { %p2587_p5 = scmp.ne.s32.totalorder %s2814_s8, %s2586_s14  ;;  %s2591_s15 = scalar_lea.hbm %s3067_s1, 65536 }
  0x2e   : > { %p2592_p13 = scmp.lt.s32.totalorder %s2814_s8, %s3067_s1  ;;  %p2593_p1 = scmp.lt.s32.totalorder %s2591_s15, %s2586_s14 }
  0x2f   : > { %p2589_p9 = pnand %p2588_p8, %p2587_p5 }
  0x30   : > { %p2594_p6 = por %p2593_p1, %p2592_p13 }
  0x31   : > { %p2590_p10 = pneg %p2589_p9 }
  0x33   : > { %p2595_p11 = pnand %p2594_p6, %p2590_p10 }
  0x35   : > { %2598 = shalt.err (!%p2595_p11)
}
  0x36   : > { %s2599_s11 = scalar_lea.vmem %s2816_s12, 16384  ;;  %s2684_s18 = smov [#allocation3]  }
  0x37   : > { %p2600_p4 = scmp.ne.s32.totalorder %s2816_s12, %s2599_s11  ;;  %s2604_s24 = sshll.u32 %s2684_s18, 4  ;;  %s2605_s24 = int_to_ptr.vmem [resolvable:$false] %s2604_s24 }
  0x38   : > { %s2606_s25 = scalar_lea.vmem %s2605_s24, 32768  ;;  %p2607_p3 = scmp.lt.s32.totalorder %s2816_s12, %s2605_s24 }
  0x39   : > { %p2602_p12 = pnand %p2600_p4, %p2588_p8  ;;  %p2608_p7 = scmp.lt.s32.totalorder %s2606_s25, %s2599_s11 }
  0x3b   : > { %p2603_p2 = pneg %p2602_p12  ;;  %p2609_p5 = por %p2608_p7, %p2607_p3 }
  0x3d   : > { %p2610_p9 = pnand %p2609_p5, %p2603_p2 }
  0x3f   : > { %2613 = shalt.err (!%p2610_p9)
}
  0x40   : > { %s2685_s27 = smov 64   ;;  %s2686_s30 = smov 4  }
  0x41   : > { %2347 = dma.hbm_to_vmem [thread:$0]  (!%p2785_p0), %s2814_s8, 16384, %s2816_s12, %s2820_s13, %s2685_s27, %s2685_s27, %s2686_s30  }
  0x42   : > { %p3080_p8 = scmp.ne.s32.totalorder %s3077_s29, 0 }
  0x43   : > { %s232_s6 = sand.u32 (!%p3080_p8), 1, %s2672_s19   ;;  %p3081_p10 = scmp.ne.s32.totalorder (!%p3080_p8), %s3076_s28, 0 }
  0x44   : > { %230 = sbr.rel (%p3080_p8) target bundleno = 667 (0x29b), region = 40  ;;  %s1969_s7 = sshll.u32 (!%p3080_p8), %s232_s6, 10 }
  0x45   : > { %s233_s14 = scalar_lea.sflag (!%p3080_p8), [#allocation4], %s232_s6  ;;  %s2844_s21 = scalar_lea.vmem (!%p3080_p8), [#allocation3], %s1969_s7 }
  0x49   : > { %2655 = dma.done.wait (%p3081_p10), %s233_s14, 16384  }
  0x4a   : > { %2657 = vsyncadd (%p3081_p10), %s233_s14, 4294950912  ;;  %p3082_p13 = scmp.eq.s32.totalorder %s2741_s22, 0 }
  0x4c   : > { %2659 = dma.done.wait (%p3082_p13), [#allocation7], 32   ;;  %p3083_p0 = pmov %p3082_p13 }
  0x4d   : > { %s1972_s29 = sshll.u32 %s2741_s22, 4  ;;  %p3084_p6 = scmp.ne.s32.totalorder %s2741_s22, 0 }
  0x4e   : > { %2661 = vsyncadd (%p3083_p0), [#allocation7], 4294967264  ;;  %p271_p1 = scmp.lt.s32.totalorder %s1972_s29, 63 }
  0x4f   : > { %280 = sbr.rel (%p3084_p6) target bundleno = 86 (0x56), region = 56 }
  0x50   : > { %s3090_s29 = smov (!%p271_p1, %s1972_s29), 63 }
  0x51   : > { %s2858_s12 = scalar_lea.vmem %s3066_s0, %s3090_s29 }
  0x54   : > { %v2687_v0 = vmov 0.0  }
  0x55   : > { %281 = vst [vmem:[#allocation2] sm:$0x3] %v2687_v0 }
  0x56 PF: > { %v2396_v1 = vld [vmem:[%s2844_s21 + $0x78] sm:$0xff]   ;;  %v2400_v5 = vld [vmem:[%s2844_s21 + $0x70] sm:$0xff]   ;;  %v2404_v9 = vld [vmem:[%s2844_s21 + $0x68] sm:$0xff]   ;;  %v547_v29 = vlaneseq  ;;  %v2688_v37 = vmov 1966171168   ;;  %p2102_p11 = scmp.ne.s32.totalorder %s2741_s22, 3 }
  0x57   : > { %v2397_v2 = vld [vmem:[%s2844_s21 + $0xf8] sm:$0xff]   ;;  %2118 = vmatprep.subr.bf16.mxu0 %v2396_v1  ;;  %v2401_v6 = vld [vmem:[%s2844_s21 + $0xf0] sm:$0xff]   ;;  %v2405_v10 = vld [vmem:[%s2844_s21 + $0xe8] sm:$0xff]   ;;  %v545_v38 = vunpack.c.l.s4 %v2688_v37 }
  0x58   : > { %v2398_v3 = vld [vmem:[%s2844_s21 + $0x38] sm:$0xff]   ;;  %2140 = vmatprep.subr.bf16.mxu1 %v2397_v2  ;;  %v2402_v7 = vld [vmem:[%s2844_s21 + $0x30] sm:$0xff]   ;;  %v2406_v11 = vld [vmem:[%s2844_s21 + $0x28] sm:$0xff]   ;;  %v548_v34 = vshrl.u32 %v547_v29, 7 }
  0x59   : > { %v2399_v4 = vld [vmem:[%s2844_s21 + $0xb8] sm:$0xff]   ;;  %2119 = vmatpush3.bf16.msra.mxu0 %v2398_v3  ;;  %v2403_v8 = vld [vmem:[%s2844_s21 + $0xb0] sm:$0xff]   ;;  %v2407_v12 = vld [vmem:[%s2844_s21 + $0xa8] sm:$0xff]   ;;  %v546_v41 = vunpack.c.0.s8 %v545_v38 }
  0x5a   : > { %2141 = vmatpush3.bf16.msra.mxu1 %v2399_v4  ;;  %2120 = vmatprep.subr.bf16.mxu0 %v2400_v5  ;;  %v2408_v13 = vld [vmem:[%s2844_s21 + $0x60] sm:$0xff]   ;;  %v2412_v17 = vld [vmem:[%s2844_s21 + $0x58] sm:$0xff]   ;;  %v2416_v21 = vld [vmem:[%s2844_s21 + $0x50] sm:$0xff]  }
  0x5b   : > { %2142 = vmatprep.subr.bf16.mxu1 %v2401_v6  ;;  %v2409_v14 = vld [vmem:[%s2844_s21 + $0xe0] sm:$0xff]   ;;  %v2413_v18 = vld [vmem:[%s2844_s21 + $0xd8] sm:$0xff]   ;;  %v2417_v22 = vld [vmem:[%s2844_s21 + $0xd0] sm:$0xff]   ;;  %v2897_v42 = vsub.s32 %v546_v41, %v548_v34 }
  0x5c   : > { %v2410_v15 = vld [vmem:[%s2844_s21 + $0x20] sm:$0xff]   ;;  %v2414_v19 = vld [vmem:[%s2844_s21 + $0x18] sm:$0xff]   ;;  %v2418_v23 = vld [vmem:[%s2844_s21 + $0x10] sm:$0xff]  }
  0x5d   : > { %2121 = vmatpush3.bf16.msra.mxu0 %v2402_v7  ;;  %v2411_v16 = vld [vmem:[%s2844_s21 + $0xa0] sm:$0xff]   ;;  %v2415_v20 = vld [vmem:[%s2844_s21 + $0x98] sm:$0xff]   ;;  %v2419_v24 = vld [vmem:[%s2844_s21 + $0x90] sm:$0xff]  }
  0x5e   : > { %2143 = vmatpush3.bf16.msra.mxu1 %v2403_v8  ;;  %2122 = vmatprep.subr.bf16.mxu0 %v2404_v9  ;;  %v2420_v25 = vld [vmem:[%s2844_s21 + $0x48] sm:$0xff]   ;;  %v2424_v30 = vld [vmem:[%s2844_s21 + $0x40] sm:$0xff]   ;;  %v2429_v36 = vld [vmem:[%s2844_s21 + $0x178] sm:$0xff]  }
  0x5f   : > { %2144 = vmatprep.subr.bf16.mxu1 %v2405_v10  ;;  %v2421_v26 = vld [vmem:[%s2844_s21 + $0xc8] sm:$0xff]   ;;  %v2425_v31 = vld [vmem:[%s2844_s21 + $0xc0] sm:$0xff]   ;;  %v2430_v39 = vld [vmem:[%s2844_s21 + $0x1f8] sm:$0xff]  }
  0x60   : > { %v2422_v27 = vld [vmem:[%s2844_s21 + $0x8] sm:$0xff]   ;;  %v2426_v32 = vld [vmem:[%s2844_s21] sm:$0xff]   ;;  %v2431_v49 = vld [vmem:[%s2844_s21 + $0x138] sm:$0xff]  }
  0x61   : > { %2123 = vmatpush3.bf16.msra.mxu0 %v2406_v11  ;;  %v2423_v28 = vld [vmem:[%s2844_s21 + $0x88] sm:$0xff]   ;;  %v2427_v33 = vld [vmem:[%s2844_s21 + $0x80] sm:$0xff]   ;;  %v2433_v52 = vld [vmem:[%s2844_s21 + $0x170] sm:$0xff]  }
  0x62   : > { %2145 = vmatpush3.bf16.msra.mxu1 %v2407_v12  ;;  %2124 = vmatprep.subr.bf16.mxu0 %v2408_v13  ;;  %v283_v35 = vld [vmem:[%s2858_s12] sm:$0xff]  ;;  %v2434_v55 = vld [vmem:[%s2844_s21 + $0x1f0] sm:$0xff]   ;;  %v2437_v58 = vld [vmem:[%s2844_s21 + $0x168] sm:$0xff]  }
  0x63   : > { %2146 = vmatprep.subr.bf16.mxu1 %v2409_v14  ;;  %v543_v40 = vcombine.high %v283_v35, %v283_v35  ;;  %v550_v43 = vrot.slane %v283_v35, %v2897_v42  ;;  %v2432_v54 = vld [vmem:[%s2844_s21 + $0x1b8] sm:$0xff]   ;;  %v2435_v57 = vld [vmem:[%s2844_s21 + $0x130] sm:$0xff]   ;;  %v2438_v60 = vld [vmem:[%s2844_s21 + $0x1e8] sm:$0xff]  }
  0x64   : > { %v2436_v59 = vld [vmem:[%s2844_s21 + $0x1b0] sm:$0xff]   ;;  %v2439_v61 = vld [vmem:[%s2844_s21 + $0x128] sm:$0xff]   ;;  %v2441_v62 = vld [vmem:[%s2844_s21 + $0x160] sm:$0xff]  }
  0x65   : > { %2125 = vmatpush3.bf16.msra.mxu0 %v2410_v15  ;;  %v2901_v44 = vrot.slane %v543_v40, %v2897_v42  ;;  %v558_v45 = vcombine.high %v550_v43, %v550_v43  ;;  %v566_v46 = vrot.slane %v550_v43, %v2897_v42  ;;  %v2440_v63 = vld [vmem:[%s2844_s21 + $0x1a8] sm:$0xff]   ;;  %v2442_v0 = vld [vmem:[%s2844_s21 + $0x1e0] sm:$0xff]   ;;  %v2445_v2 = vld [vmem:[%s2844_s21 + $0x158] sm:$0xff]  }
  0x66   : > { %2147 = vmatpush3.bf16.msra.mxu1 %v2411_v16  ;;  %2126 = vmatprep.subr.bf16.mxu0 %v2412_v17  ;;  %v2443_v1 = vld [vmem:[%s2844_s21 + $0x120] sm:$0xff]   ;;  %v2446_v4 = vld [vmem:[%s2844_s21 + $0x1d8] sm:$0xff]   ;;  %v2449_v6 = vld [vmem:[%s2844_s21 + $0x150] sm:$0xff]  }
  0x67   : > { %2148 = vmatprep.subr.bf16.mxu1 %v2413_v18  ;;  %v559_v47 = vcombine.high %v2901_v44, %v2901_v44  ;;  %v580_v48 = vrot.slane %v558_v45, %v2897_v42  ;;  %v588_v51 = vcombine.high %v566_v46, %v566_v46  ;;  %v2444_v3 = vld [vmem:[%s2844_s21 + $0x1a0] sm:$0xff]   ;;  %v2447_v5 = vld [vmem:[%s2844_s21 + $0x118] sm:$0xff]   ;;  %v2450_v8 = vld [vmem:[%s2844_s21 + $0x1d0] sm:$0xff]   ;;  %v573_v18 = vrot.slane %v2901_v44, %v2897_v42 }
  0x68   : > { %v2448_v7 = vld [vmem:[%s2844_s21 + $0x198] sm:$0xff]   ;;  %v2451_v9 = vld [vmem:[%s2844_s21 + $0x110] sm:$0xff]   ;;  %v2453_v10 = vld [vmem:[%s2844_s21 + $0x148] sm:$0xff]  }
  0x69   : > { %2127 = vmatpush3.bf16.msra.mxu0 %v2414_v19  ;;  %v587_v50 = vrot.slane %v559_v47, %v2897_v42  ;;  %1457 = vmatprep.mubr.bf16.mxu0 %v580_v48  ;;  %v590_v53 = vcombine.high %v580_v48, %v580_v48  ;;  %v2452_v11 = vld [vmem:[%s2844_s21 + $0x190] sm:$0xff]   ;;  %v2454_v12 = vld [vmem:[%s2844_s21 + $0x1c8] sm:$0xff]   ;;  %v2457_v14 = vld [vmem:[%s2844_s21 + $0x140] sm:$0xff]  }
  0x6a   : > { %2149 = vmatpush3.bf16.msra.mxu1 %v2415_v20  ;;  %2128 = vmatprep.subr.bf16.mxu0 %v2416_v21  ;;  %v2455_v13 = vld [vmem:[%s2844_s21 + $0x108] sm:$0xff]   ;;  %v2458_v16 = vld [vmem:[%s2844_s21 + $0x1c0] sm:$0xff]   ;;  %v2461_v19 = vld [vmem:[%s2844_s21 + $0x278] sm:$0xff]  }
  0x6b   : > { %2150 = vmatprep.subr.bf16.mxu1 %v2417_v22  ;;  %v591_v56 = vcombine.high %v587_v50, %v587_v50  ;;  %1497 = vmatprep.mubr.bf16.mxu1 %v590_v53  ;;  %v2456_v15 = vld [vmem:[%s2844_s21 + $0x188] sm:$0xff]   ;;  %v2459_v17 = vld [vmem:[%s2844_s21 + $0x100] sm:$0xff]   ;;  %v2462_v21 = vld [vmem:[%s2844_s21 + $0x2f8] sm:$0xff]  }
  0x6c   : > { %v2460_v20 = vld [vmem:[%s2844_s21 + $0x180] sm:$0xff]   ;;  %v2463_v22 = vld [vmem:[%s2844_s21 + $0x238] sm:$0xff]   ;;  %v2468_v29 = vld [vmem:[%s2844_s21 + $0x2b0] sm:$0xff]  }
  0x6d   : > { %2129 = vmatpush3.bf16.msra.mxu0 %v2418_v23  ;;  %v589_v23 = vcombine.high %v573_v18, %v573_v18  ;;  %v2474_v34 = vld [vmem:[%s2844_s21 + $0x2e0] sm:$0xff]   ;;  %v2478_v38 = vld [vmem:[%s2844_s21 + $0x2d8] sm:$0xff]   ;;  %v2481_v40 = vld [vmem:[%s2844_s21 + $0x250] sm:$0xff]  }
  0x6e   : > { %2151 = vmatpush3.bf16.msra.mxu1 %v2419_v24  ;;  %2130 = vmatprep.subr.bf16.mxu0 %v2420_v25  ;;  %v2465_v24 = vld [vmem:[%s2844_s21 + $0x270] sm:$0xff]   ;;  %v2464_v25 = vld [vmem:[%s2844_s21 + $0x2b8] sm:$0xff]   ;;  %v2475_v35 = vld [vmem:[%s2844_s21 + $0x220] sm:$0xff]  }
  0x6f   : > { %2152 = vmatprep.subr.bf16.mxu1 %v2421_v26  ;;  %v2466_v26 = vld [vmem:[%s2844_s21 + $0x2f0] sm:$0xff]   ;;  %v2476_v37 = vld [vmem:[%s2844_s21 + $0x2a0] sm:$0xff]   ;;  %v2480_v41 = vld [vmem:[%s2844_s21 + $0x298] sm:$0xff]  }
  0x70   : > { %v2482_v43 = vld [vmem:[%s2844_s21 + $0x2d0] sm:$0xff]   ;;  %v2485_v45 = vld [vmem:[%s2844_s21 + $0x248] sm:$0xff]  }
  0x71   : > { %2131 = vmatpush3.bf16.msra.mxu0 %v2422_v27  ;;  %v2467_v27 = vld [vmem:[%s2844_s21 + $0x230] sm:$0xff]  }
  0x72   : > { %2153 = vmatpush3.bf16.msra.mxu1 %v2423_v28  ;;  %2132 = vmatprep.subr.bf16.mxu0 %v2424_v30  ;;  %v2469_v28 = vld [vmem:[%s2844_s21 + $0x268] sm:$0xff]   ;;  %v2483_v44 = vld [vmem:[%s2844_s21 + $0x210] sm:$0xff]  }
  0x73   : > { %2154 = vmatprep.subr.bf16.mxu1 %v2425_v31  ;;  %v2470_v30 = vld [vmem:[%s2844_s21 + $0x2e8] sm:$0xff]   ;;  %v2484_v47 = vld [vmem:[%s2844_s21 + $0x290] sm:$0xff]  }
  0x74   : > { %v2471_v31 = vld [vmem:[%s2844_s21 + $0x228] sm:$0xff]  }
  0x75   : > { %2133 = vmatpush3.bf16.msra.mxu0 %v2426_v32  ;;  %v2473_v32 = vld [vmem:[%s2844_s21 + $0x260] sm:$0xff]  }
  0x76   : > { %2155 = vmatpush3.bf16.msra.mxu1 %v2427_v33  ;;  %2162 = vmatprep.subr.bf16.mxu0 %v2429_v36  ;;  %v2472_v33 = vld [vmem:[%s2844_s21 + $0x2a8] sm:$0xff]   ;;  %v2477_v36 = vld [vmem:[%s2844_s21 + $0x258] sm:$0xff]  }
  0x77   : > { %2184 = vmatprep.subr.bf16.mxu1 %v2430_v39  ;;  %v2479_v39 = vld [vmem:[%s2844_s21 + $0x218] sm:$0xff]  }
  0x78   : > { %1458 = vmatmul.mubr.bf16.vlgmr.msra.gmra.mxu0 %v566_v46  ;;  %v284_v46 = vld [vmem:[%s2858_s12 + $0x8] sm:$0xff] }
  0x79   : > { %2163 = vmatpush3.bf16.msra.mxu0 %v2431_v49  ;;  %1498 = vmatmul.mubr.bf16.vlgmr.msra.gmra.mxu1 %v588_v51  ;;  %v599_v48 = vrot.slane %v284_v46, %v2897_v42  ;;  %v592_v49 = vcombine.high %v284_v46, %v284_v46  ;;  %v2487_v51 = vld [vmem:[%s2844_s21 + $0x208] sm:$0xff]  }
  0x7a   : > { %2164 = vmatprep.subr.bf16.mxu0 %v2433_v52  ;;  %2185 = vmatpush3.bf16.msra.mxu1 %v2432_v54  ;;  %v2489_v54 = vld [vmem:[%s2844_s21 + $0x240] sm:$0xff]  }
  0x7b   : > { %1537 = vmatprep.mubr.bf16.mxu0 %v587_v50  ;;  %2186 = vmatprep.subr.bf16.mxu1 %v2434_v55  ;;  %v2486_v50 = vld [vmem:[%s2844_s21 + $0x2c8] sm:$0xff]   ;;  %v607_v52 = vcombine.high %v599_v48, %v599_v48  ;;  %v2970_v53 = vrot.slane %v592_v49, %v2897_v42 }
  0x7c   : > { %1577 = vmatprep.mubr.bf16.mxu1 %v591_v56  ;;  %v2488_v55 = vld [vmem:[%s2844_s21 + $0x288] sm:$0xff]  }
  0x7d   : > { %2165 = vmatpush3.bf16.msra.mxu0 %v2435_v57  ;;  %v629_v56 = vrot.slane %v607_v52, %v2897_v42  ;;  %v608_v57 = vcombine.high %v2970_v53, %v2970_v53 }
  0x7e   : > { %2166 = vmatprep.subr.bf16.mxu0 %v2437_v58  ;;  %2187 = vmatpush3.bf16.msra.mxu1 %v2436_v59  ;;  %v2490_v58 = vld [vmem:[%s2844_s21 + $0x2c0] sm:$0xff]  }
  0x7f   : > { %2188 = vmatprep.subr.bf16.mxu1 %v2438_v60  ;;  %v2491_v59 = vld [vmem:[%s2844_s21 + $0x200] sm:$0xff]   ;;  %v639_v60 = vcombine.high %v629_v56, %v629_v56 }
  0x81   : > { %2167 = vmatpush3.bf16.msra.mxu0 %v2439_v61  ;;  %v615_v61 = vrot.slane %v599_v48, %v2897_v42 }
  0x82   : > { %2168 = vmatprep.subr.bf16.mxu0 %v2441_v62  ;;  %2189 = vmatpush3.bf16.msra.mxu1 %v2440_v63  ;;  %v2493_v62 = vld [vmem:[%s2844_s21 + $0x378] sm:$0xff]   ;;  %v2492_v63 = vld [vmem:[%s2844_s21 + $0x280] sm:$0xff]  }
  0x83   : > { %2190 = vmatprep.subr.bf16.mxu1 %v2442_v0  ;;  %v636_v0 = vrot.slane %v608_v57, %v2897_v42 }
  0x85   : > { %2169 = vmatpush3.bf16.msra.mxu0 %v2443_v1  ;;  %v2494_v1 = vld [vmem:[%s2844_s21 + $0x3f8] sm:$0xff]  }
  0x86   : > { %2170 = vmatprep.subr.bf16.mxu0 %v2445_v2  ;;  %2191 = vmatpush3.bf16.msra.mxu1 %v2444_v3  ;;  %v2495_v2 = vld [vmem:[%s2844_s21 + $0x338] sm:$0xff]   ;;  %v637_v3 = vcombine.high %v615_v61, %v615_v61 }
  0x87   : > { %2192 = vmatprep.subr.bf16.mxu1 %v2446_v4  ;;  %v2497_v4 = vld [vmem:[%s2844_s21 + $0x370] sm:$0xff]  }
  0x89   : > { %2171 = vmatpush3.bf16.msra.mxu0 %v2447_v5  ;;  %v2496_v5 = vld [vmem:[%s2844_s21 + $0x3b8] sm:$0xff]  }
  0x8a   : > { %2172 = vmatprep.subr.bf16.mxu0 %v2449_v6  ;;  %2193 = vmatpush3.bf16.msra.mxu1 %v2448_v7  ;;  %v640_v6 = vcombine.high %v636_v0, %v636_v0  ;;  %v2498_v7 = vld [vmem:[%s2844_s21 + $0x3f0] sm:$0xff]  }
  0x8b   : > { %2194 = vmatprep.subr.bf16.mxu1 %v2450_v8  ;;  %v2499_v8 = vld [vmem:[%s2844_s21 + $0x330] sm:$0xff]  }
  0x8d   : > { %2173 = vmatpush3.bf16.msra.mxu0 %v2451_v9  ;;  %v2501_v9 = vld [vmem:[%s2844_s21 + $0x368] sm:$0xff]  }
  0x8e   : > { %2174 = vmatprep.subr.bf16.mxu0 %v2453_v10  ;;  %2195 = vmatpush3.bf16.msra.mxu1 %v2452_v11  ;;  %v2500_v10 = vld [vmem:[%s2844_s21 + $0x3b0] sm:$0xff]   ;;  %v2502_v11 = vld [vmem:[%s2844_s21 + $0x3e8] sm:$0xff]  }
  0x8f   : > { %2196 = vmatprep.subr.bf16.mxu1 %v2454_v12  ;;  %v2503_v12 = vld [vmem:[%s2844_s21 + $0x328] sm:$0xff]  }
  0x91   : > { %2175 = vmatpush3.bf16.msra.mxu0 %v2455_v13  ;;  %v2505_v13 = vld [vmem:[%s2844_s21 + $0x360] sm:$0xff]  }
  0x92   : > { %2176 = vmatprep.subr.bf16.mxu0 %v2457_v14  ;;  %2197 = vmatpush3.bf16.msra.mxu1 %v2456_v15  ;;  %v2504_v14 = vld [vmem:[%s2844_s21 + $0x3a8] sm:$0xff]   ;;  %v2506_v15 = vld [vmem:[%s2844_s21 + $0x3e0] sm:$0xff]  }
  0x93   : > { %2198 = vmatprep.subr.bf16.mxu1 %v2458_v16  ;;  %v2507_v16 = vld [vmem:[%s2844_s21 + $0x320] sm:$0xff]  }
  0x95   : > { %2177 = vmatpush3.bf16.msra.mxu0 %v2459_v17  ;;  %v2509_v17 = vld [vmem:[%s2844_s21 + $0x358] sm:$0xff]  }
  0x96   : > { %2206 = vmatprep.subr.bf16.mxu0 %v2461_v19  ;;  %2199 = vmatpush3.bf16.msra.mxu1 %v2460_v20  ;;  %v2510_v19 = vld [vmem:[%s2844_s21 + $0x3d8] sm:$0xff]  }
  0x97   : > { %2228 = vmatprep.subr.bf16.mxu1 %v2462_v21  ;;  %v2511_v20 = vld [vmem:[%s2844_s21 + $0x318] sm:$0xff]   ;;  %v2513_v21 = vld [vmem:[%s2844_s21 + $0x350] sm:$0xff]  }
  0x98   : > { %1538 = vmatmul.mubr.bf16.vlgmr.msra.gmra.mxu0 %v573_v18  ;;  %v2508_v18 = vld [vmem:[%s2844_s21 + $0x3a0] sm:$0xff]  }
  0x99   : > { %2207 = vmatpush3.bf16.msra.mxu0 %v2463_v22  ;;  %1578 = vmatmul.mubr.bf16.vlgmr.msra.gmra.mxu1 %v589_v23  ;;  %v2512_v22 = vld [vmem:[%s2844_s21 + $0x398] sm:$0xff]   ;;  %v2514_v23 = vld [vmem:[%s2844_s21 + $0x3d0] sm:$0xff]  }
  0x9a   : > { %2208 = vmatprep.subr.bf16.mxu0 %v2465_v24  ;;  %2229 = vmatpush3.bf16.msra.mxu1 %v2464_v25  ;;  %v2515_v24 = vld [vmem:[%s2844_s21 + $0x310] sm:$0xff]   ;;  %v2517_v25 = vld [vmem:[%s2844_s21 + $0x348] sm:$0xff]  }
  0x9b   : > { %2230 = vmatprep.subr.bf16.mxu1 %v2466_v26  ;;  %1617 = vmatprep.mubr.bf16.mxu0 %v629_v56  ;;  %v2516_v26 = vld [vmem:[%s2844_s21 + $0x390] sm:$0xff]  }
  0x9c   : > { %1657 = vmatprep.mubr.bf16.mxu1 %v639_v60 }
  0x9d   : > { %2209 = vmatpush3.bf16.msra.mxu0 %v2467_v27  ;;  %v2518_v27 = vld [vmem:[%s2844_s21 + $0x3c8] sm:$0xff]  }
  0x9e   : > { %2210 = vmatprep.subr.bf16.mxu0 %v2469_v28  ;;  %2231 = vmatpush3.bf16.msra.mxu1 %v2468_v29  ;;  %v2519_v28 = vld [vmem:[%s2844_s21 + $0x308] sm:$0xff]   ;;  %v2521_v29 = vld [vmem:[%s2844_s21 + $0x340] sm:$0xff]  }
  0x9f   : > { %2232 = vmatprep.subr.bf16.mxu1 %v2470_v30  ;;  %v2520_v30 = vld [vmem:[%s2844_s21 + $0x388] sm:$0xff]  }
  0xa1   : > { %2211 = vmatpush3.bf16.msra.mxu0 %v2471_v31  ;;  %v2522_v31 = vld [vmem:[%s2844_s21 + $0x3c0] sm:$0xff]  }
  0xa2   : > { %2212 = vmatprep.subr.bf16.mxu0 %v2473_v32  ;;  %2233 = vmatpush3.bf16.msra.mxu1 %v2472_v33  ;;  %v2523_v32 = vld [vmem:[%s2844_s21 + $0x300] sm:$0xff]   ;;  %v622_v33 = vrot.slane %v2970_v53, %v2897_v42 }
  0xa3   : > { %2234 = vmatprep.subr.bf16.mxu1 %v2474_v34  ;;  %v2524_v34 = vld [vmem:[%s2844_s21 + $0x380] sm:$0xff]  }
  0xa5   : > { %2213 = vmatpush3.bf16.msra.mxu0 %v2475_v35  ;;  %v638_v35 = vcombine.high %v622_v33, %v622_v33 }
  0xa6   : > { %2214 = vmatprep.subr.bf16.mxu0 %v2477_v36  ;;  %2235 = vmatpush3.bf16.msra.mxu1 %v2476_v37 }
  0xa7   : > { %2236 = vmatprep.subr.bf16.mxu1 %v2478_v38 }
  0xa9   : > { %2215 = vmatpush3.bf16.msra.mxu0 %v2479_v39 }
  0xaa   : > { %2216 = vmatprep.subr.bf16.mxu0 %v2481_v40  ;;  %2237 = vmatpush3.bf16.msra.mxu1 %v2480_v41 }
  0xab   : > { %2238 = vmatprep.subr.bf16.mxu1 %v2482_v43 }
  0xad   : > { %2217 = vmatpush3.bf16.msra.mxu0 %v2483_v44 }
  0xae   : > { %2218 = vmatprep.subr.bf16.mxu0 %v2485_v45  ;;  %2239 = vmatpush3.bf16.msra.mxu1 %v2484_v47 }
  0xaf   : > { %2240 = vmatprep.subr.bf16.mxu1 %v2486_v50 }
  0xb1   : > { %2219 = vmatpush3.bf16.msra.mxu0 %v2487_v51 }
  0xb2   : > { %2220 = vmatprep.subr.bf16.mxu0 %v2489_v54  ;;  %2241 = vmatpush3.bf16.msra.mxu1 %v2488_v55 }
  0xb3   : > { %2242 = vmatprep.subr.bf16.mxu1 %v2490_v58 }
  0xb5   : > { %2221 = vmatpush3.bf16.msra.mxu0 %v2491_v59 }
  0xb6   : > { %2250 = vmatprep.subr.bf16.mxu0 %v2493_v62  ;;  %2243 = vmatpush3.bf16.msra.mxu1 %v2492_v63 }
  0xb7   : > { %2272 = vmatprep.subr.bf16.mxu1 %v2494_v1 }
  0xb8   : > { %1618 = vmatmul.mubr.bf16.vlgmr.msra.gmra.mxu0 %v615_v61 }
  0xb9   : > { %2251 = vmatpush3.bf16.msra.mxu0 %v2495_v2  ;;  %1697 = vmatprep.mubr.bf16.mxu0 %v636_v0 }
  0xba   : > { %1658 = vmatmul.mubr.bf16.vlgmr.msra.gmra.mxu1 %v637_v3  ;;  %2252 = vmatprep.subr.bf16.mxu0 %v2497_v4 }
  0xbb   : > { %2273 = vmatpush3.bf16.msra.mxu1 %v2496_v5  ;;  %1737 = vmatprep.mubr.bf16.mxu1 %v640_v6 }
  0xbc   : > { %2274 = vmatprep.subr.bf16.mxu1 %v2498_v7 }
  0xbd   : > { %2253 = vmatpush3.bf16.msra.mxu0 %v2499_v8 }
  0xbe   : > { %2254 = vmatprep.subr.bf16.mxu0 %v2501_v9 }
  0xbf   : > { %2275 = vmatpush3.bf16.msra.mxu1 %v2500_v10 }
  0xc0   : > { %2276 = vmatprep.subr.bf16.mxu1 %v2502_v11 }
  0xc1   : > { %2255 = vmatpush3.bf16.msra.mxu0 %v2503_v12 }
  0xc2   : > { %2256 = vmatprep.subr.bf16.mxu0 %v2505_v13 }
  0xc3   : > { %2277 = vmatpush3.bf16.msra.mxu1 %v2504_v14 }
  0xc4   : > { %2278 = vmatprep.subr.bf16.mxu1 %v2506_v15  ;;  %v282_v15 = vld [vmem:[#allocation2] sm:$0x3] }
  0xc5   : > { %2257 = vmatpush3.bf16.msra.mxu0 %v2507_v16 }
  0xc6   : > { %2258 = vmatprep.subr.bf16.mxu0 %v2509_v17 }
  0xc7   : > { %2279 = vmatpush3.bf16.msra.mxu1 %v2508_v18 }
  0xc8   : > { %2280 = vmatprep.subr.bf16.mxu1 %v2510_v19 }
  0xc9   : > { %2259 = vmatpush3.bf16.msra.mxu0 %v2511_v20 }
  0xca   : > { %2260 = vmatprep.subr.bf16.mxu0 %v2513_v21 }
  0xcb   : > { %2281 = vmatpush3.bf16.msra.mxu1 %v2512_v22 }
  0xcc   : > { %2282 = vmatprep.subr.bf16.mxu1 %v2514_v23 }
  0xcd   : > { %2261 = vmatpush3.bf16.msra.mxu0 %v2515_v24 }
  0xce   : > { %2262 = vmatprep.subr.bf16.mxu0 %v2517_v25 }
  0xcf   : > { %2283 = vmatpush3.bf16.msra.mxu1 %v2516_v26 }
  0xd0   : > { %2284 = vmatprep.subr.bf16.mxu1 %v2518_v27 }
  0xd1   : > { %2263 = vmatpush3.bf16.msra.mxu0 %v2519_v28 }
  0xd2   : > { %2264 = vmatprep.subr.bf16.mxu0 %v2521_v29 }
  0xd3   : > { %2285 = vmatpush3.bf16.msra.mxu1 %v2520_v30 }
  0xd4   : > { %2286 = vmatprep.subr.bf16.mxu1 %v2522_v31 }
  0xd5   : > { %2265 = vmatpush3.bf16.msra.mxu0 %v2523_v32 }
  0xd7   : > { %2287 = vmatpush3.bf16.msra.mxu1 %v2524_v34 }
  0xd8   : > { %1698 = vmatmul.mubr.bf16.vlgmr.msra.gmra.mxu0 %v622_v33 }
  0xda   : > { %1738 = vmatmul.mubr.bf16.vlgmr.msra.gmra.mxu1 %v638_v35 }
 0x138   : > { %v2134_v36 = vpop.f32.mrf.mxu0 }
 0x139   : > { %v2156_v37 = vpop.f32.mrf.mxu1 }
 0x13a   : > { %v2135_v38 = vpop.f32.mrf.mxu0 }
 0x13b   : > { %v2136_v39 = vadd.f32 %v2135_v38, %v2134_v36  ;;  %v2157_v40 = vpop.f32.mrf.mxu1 }
 0x13c   : > { %v2137_v41 = vpop.f32.mrf.mxu0  ;;  %v2158_v43 = vadd.f32 %v2157_v40, %v2156_v37 }
 0x13d   : > { %v2159_v44 = vpop.f32.mrf.mxu1 }
 0x13e   : > { %v2138_v45 = vpop.f32.mrf.mxu0  ;;  %v1500_v46 = vadd.f32 %v2158_v43, %v2136_v39 }
 0x13f   : > { %v2160_v47 = vpop.f32.mrf.mxu1 }
 0x158   : > { %v2178_v42 = vpop.f32.mrf.mxu0 }
 0x159   : > { %v2200_v48 = vpop.f32.mrf.mxu1 }
 0x15a   : > { %v2179_v49 = vpop.f32.mrf.mxu0 }
 0x15b   : > { %v2201_v50 = vpop.f32.mrf.mxu1  ;;  %v2180_v63 = vadd.f32 %v2179_v49, %v2178_v42 }
 0x15c   : > { %v2181_v51 = vpop.f32.mrf.mxu0  ;;  %v2202_v1 = vadd.f32 %v2201_v50, %v2200_v48 }
 0x15d   : > { %v2203_v52 = vpop.f32.mrf.mxu1  ;;  %v1540_v0 = vadd.f32 %v2180_v63, %v1500_v46 }
 0x15e   : > { %v2182_v53 = vpop.f32.mrf.mxu0 }
 0x15f   : > { %v2204_v54 = vpop.f32.mrf.mxu1  ;;  %v1580_v3 = vadd.f32 %v2202_v1, %v1540_v0 }
 0x178   : > { %v2222_v55 = vpop.f32.mrf.mxu0 }
 0x17a   : > { %v2244_v56 = vpop.f32.mrf.mxu1  ;;  %v2223_v57 = vpop.f32.mrf.mxu0 }
 0x17b   : > { %v2224_v2 = vadd.f32 %v2223_v57, %v2222_v55 }
 0x17c   : > { %v2245_v58 = vpop.f32.mrf.mxu1  ;;  %v2225_v59 = vpop.f32.mrf.mxu0 }
 0x17d   : > { %v1620_v4 = vadd.f32 %v2224_v2, %v1580_v3  ;;  %v2246_v5 = vadd.f32 %v2245_v58, %v2244_v56 }
 0x17e   : > { %v2247_v60 = vpop.f32.mrf.mxu1  ;;  %v2226_v61 = vpop.f32.mrf.mxu0 }
 0x17f   : > { %v1660_v9 = vadd.f32 %v2246_v5, %v1620_v4 }
 0x180   : > { %v2248_v62 = vpop.f32.mrf.mxu1 }
 0x198   : > { %v2266_v6 = vpop.f32.mrf.mxu0 }
 0x19a   : > { %v2288_v7 = vpop.f32.mrf.mxu1  ;;  %v2267_v8 = vpop.f32.mrf.mxu0 }
 0x19b   : > { %v2268_v10 = vadd.f32 %v2267_v8, %v2266_v6 }
 0x19c   : > { %v2289_v11 = vpop.f32.mrf.mxu1  ;;  %v2269_v12 = vpop.f32.mrf.mxu0 }
 0x19d   : > { %v1700_v13 = vadd.f32 %v2268_v10, %v1660_v9  ;;  %v2290_v14 = vadd.f32 %v2289_v11, %v2288_v7 }
 0x19e   : > { %v2291_v16 = vpop.f32.mrf.mxu1  ;;  %v2270_v17 = vpop.f32.mrf.mxu0 }
 0x19f   : > { %v1740_v18 = vadd.f32 %v2290_v14, %v1700_v13  ;;  %1750 = sbr.rel (%p2102_p11) target bundleno = 652 (0x28c), region = 60 }
 0x1a0   : > { %v2292_v19 = vpop.f32.mrf.mxu1 }
 0x1a1   : > { %v1745_v20 = vadd.f32 %v1740_v18, %v282_v15 }
 0x1a3   : > { %1746 = vst [vmem:[#allocation2] sm:$0x3] %v1745_v20 }
 0x1a4   : > { %v2526_v21 = vld [vmem:[%s3069_s3 + $0x38] sm:$0xff]   ;;  %v2689_v22 = vmov 0.0   ;;  %v2527_v23 = vld [vmem:[%s3069_s3 + $0x30] sm:$0xff]   ;;  %vm2690_vm0 = vmmov 0   ;;  %v2528_v24 = vld [vmem:[%s3069_s3 + $0x28] sm:$0xff]   ;;  %vm1873_vm1 = vcmask 74752  }
 0x1a5   : > { %2303 = vmatprep.subr.bf16.mxu0 %v2689_v22  ;;  %2319 = vmatprep.mubr.msk.bf16.mxu0 %vm2690_vm0, %v2689_v22  ;;  %v2529_v25 = vld [vmem:[%s3069_s3 + $0x20] sm:$0xff]   ;;  %v2530_v26 = vld [vmem:[%s3069_s3 + $0x18] sm:$0xff]   ;;  %v2531_v27 = vld [vmem:[%s3069_s3 + $0x10] sm:$0xff]  }
 0x1a6   : > { %2304 = vmatpush3.bf16.msra.mxu0 %v2526_v21  ;;  %v2103_v29 = vld [vmem:[#allocation6] ss:$0 sm:$0xff]  ;;  %v2532_v31 = vld [vmem:[%s3069_s3 + $0x8] sm:$0xff]   ;;  %v2104_v35 = vld [vmem:[#allocation8] ss:$0 sm:$0xff] }
 0x1a7   : > { %2305 = vmatprep.subr.bf16.mxu0 %v2689_v22  ;;  %v2533_v33 = vld [vmem:[%s3069_s3] sm:$0xff]  }
 0x1aa   : > { %2306 = vmatpush3.bf16.msra.mxu0 %v2527_v23  ;;  %v1751_v28 = vld [vmem:[#allocation2] sm:$0x3] }
 0x1ab   : > { %2307 = vmatprep.subr.bf16.mxu0 %v2689_v22  ;;  %v1759_v30 = vadd.f32 %v2103_v29, %v1751_v28 }
 0x1ad   : > { %v1760_v32 = vmax.f32 %v1759_v30, 0.0 }
 0x1ae   : > { %2308 = vmatpush3.bf16.msra.mxu0 %v2528_v24 }
 0x1af   : > { %2309 = vmatprep.subr.bf16.mxu0 %v2689_v22  ;;  %v1761_v34 = vpack.c.bf16 %v1760_v32, %v1760_v32 }
 0x1b2   : > { %2310 = vmatpush3.bf16.msra.mxu0 %v2529_v25 }
 0x1b3   : > { %2311 = vmatprep.subr.bf16.mxu0 %v2689_v22 }
 0x1b6   : > { %2312 = vmatpush3.bf16.msra.mxu0 %v2530_v26 }
 0x1b7   : > { %2313 = vmatprep.subr.bf16.mxu0 %v2689_v22 }
 0x1ba   : > { %2314 = vmatpush3.bf16.msra.mxu0 %v2531_v27 }
 0x1bb   : > { %2315 = vmatprep.subr.bf16.mxu0 %v2689_v22 }
 0x1be   : > { %2316 = vmatpush3.bf16.msra.mxu0 %v2532_v31 }
 0x1bf   : > { %2317 = vmatprep.subr.bf16.mxu0 %v2689_v22 }
 0x1c2   : > { %2318 = vmatpush3.bf16.msra.mxu0 %v2533_v33 }
 0x1c5   : > { %2320 = vmatmul.mubr.bf16.vlgmr.msra.gmra.mxu0 %v1761_v34 }
 0x285   : > { %v1867_v36 = vpop.f32.mrf.mxu0 }
 0x286   : > { %v1868_v37 = vadd.f32 %v2104_v35, %v1867_v36 }
 0x287   : > { %v2321_v38 = vpop.f32.mrf.mxu0 }
 0x288   : > { %1874 = vst.msk [vmem:[#allocation9] sm:$0x3] %vm1873_vm1, %v1868_v37 }
 0x289   : > { %v1870_v39 = vpop.f32.mrf.mxu0 }
 0x28b   : > { %v2322_v40 = vpop.f32.mrf.mxu0 }
 0x28c PF: > { %p2353_p4 = scmp.eq.s32.totalorder %s2741_s22, 3  ;;  %s2691_s29 = smov [#allocation9]  }
 0x28d   : > { %s1882_s10 = sshll.u32 %s2691_s29, 4  ;;  %s1883_s10 = int_to_ptr.vmem [resolvable:$true] %s1882_s10 }
 0x28e   : > { %s2614_s8 = scalar_lea.vmem %s1883_s10, 32  ;;  %p2621_p7 = scmp.lt.s32.totalorder %s1883_s10, %s1883_s10 }
 0x28f   : > { %p2615_p12 = scmp.ne.s32.totalorder %s1883_s10, %s2614_s8  ;;  %p2622_p5 = scmp.lt.s32.totalorder %s2614_s8, %s2614_s8 }
 0x291   : > { %p2616_p2 = pnand %p2615_p12, %p2353_p4  ;;  %p2623_p9 = por %p2622_p5, %p2621_p7 }
 0x293   : > { %p2617_p3 = pneg %p2616_p2 }
 0x295   : > { %p2624_p8 = pnand %p2623_p9, %p2617_p3 }
 0x297   : > { %2627 = shalt.err (!%p2624_p8)
}
 0x298   : > { %2334 = dma.vmem_to_hbm [thread:$0]  (%p2353_p4), %s1883_s10, 32, %s3071_s5, [#allocation5]  }
 0x299   : > { %2663 = dma.done.wait (%p2353_p4), [#allocation5], 32  }
 0x29a   : > { %2665 = vsyncadd (%p2353_p4), [#allocation5], 4294967264 }
 0x29b PF: > { %p17_p10 = scmp.ge.s32.totalorder %s2744_s23, 6   ;;  %s3085_s18 = smov %s2672_s19 }
 0x29c   : > { %s3086_s19 = smov %s2676_s20  ;;  %s3087_s20 = smov %s2754_s26 }
 0x29d   : > { %s3088_s21 = smov %s2744_s23  ;;  %19 = sbr.rel (!%p17_p10) target bundleno = 5 (0x5), region = 96 }
 0x2a2   :  { %1895 = vsyncpa [#allocation4], 1 }
 0x2a3   :  { %1897 = vsyncpa [#allocation4 + $0x1], 1 }
 0x2a4   :  { %1898 = vsyncpa [#allocation7], 1 }
 0x2a5   :  { %1899 = vsyncpa [#allocation5], 1 }
 0x2a6   :  { %1901 = vsyncpa [#allocation5 + $0x1], 1 }

</bundles_post_ra>
